<compile_context>
chip_gen: v6e
topology: v6e:2x2x1
jax: 0.10.0
libtpu: 0.0.40
codegen_flags: <defaults>
</compile_context>

<pallas_src>
import jax
import jax.numpy as jnp
from jax import lax
from jax.experimental import pallas as pl
from jax.experimental.pallas import tpu as pltpu

LN_EPS = 1e-5  # torch.nn.LayerNorm default
LANE = 128


def _round_up(n, m):
    return ((n + m - 1) // m) * m


def _pad2d(a, rows, cols):
    r, c = a.shape
    if r == rows and c == cols:
        return a
    return jnp.pad(a, ((0, rows - r), (0, cols - c)))


# ----------------------------------------------------------------------------
# Fused kernel: [EncoderBlock]*n  ->  proj Linear  ->  VectorQuantizer
# ----------------------------------------------------------------------------
def _make_fused_kernel(n_blocks, d_model, n_rows):
    """n_blocks, d_model (real, unpadded) and n_rows (real N) are static."""
    inv_d = 1.0 / float(d_model)

    def kernel(*refs):
        x_ref = refs[0]
        blk = refs[1:1 + 4 * n_blocks]
        (wp_ref, bp_ref, cb_ref, cbt_ref, esq_ref) = refs[1 + 4 * n_blocks:6 + 4 * n_blocks]
        zq_ref, idx_ref, sse_ref = refs[6 + 4 * n_blocks:]

        tm = x_ref.shape[0]
        h = x_ref[...]                                     # bf16 (tm, Din_p)

        # ---- EncoderBlock chain: LayerNorm(ReLU(h @ W + b)) ----------------
        # Padded feature lanes of z are exactly 0 (zero-padded W columns and
        # bias, ReLU(0)=0), so the all-lane sums equal the real-lane sums and
        # var = E[z^2] - E[z]^2 is the exact real-lane variance.  Padded
        # gamma/beta lanes are 0, so padded lanes of h stay 0.  No iota/mask.
        for i in range(n_blocks):
            w, b, g, beta = blk[4 * i:4 * i + 4]
            z = jnp.dot(h, w[...], preferred_element_type=jnp.float32) + b[...]
            z = jnp.maximum(z, 0.0)                        # ReLU (f32)
            mean = jnp.sum(z, axis=-1, keepdims=True) * inv_d
            var = jnp.sum(z * z, axis=-1, keepdims=True) * inv_d - mean * mean
            hf = (z - mean) * lax.rsqrt(var + LN_EPS) * g[...] + beta[...]
            h = hf.astype(jnp.bfloat16)                    # bf16 MXU feed

        # ---- VQ projection --------------------------------------------------
        p = jnp.dot(h, wp_ref[...], preferred_element_type=jnp.float32) + bp_ref[...]

        # ---- VectorQuantizer ------------------------------------------------
        p_sq = jnp.sum(p * p, axis=-1, keepdims=True)      # (tm, 1) f32
        # Pre-transposed bf16 codebook -> plain NN matmul (no in-kernel vxpose).
        dots = jnp.dot(p.astype(jnp.bfloat16), cbt_ref[...],
                       preferred_element_type=jnp.float32)  # (tm, K_p)
        # esq precomputed in the wrapper; padded codebook rows carry +1e30 so
        # they can never win the argmin.
        d = p_sq + esq_ref[...] - 2.0 * dots               # (tm, K_p)

        # Two-reduction argmin (min, then first index attaining it) -- matches
        # torch.argmin tie-break.  A true single-pass argmin is left out since
        # variadic-reduce argmin lowering support is uncertain on Mosaic.
        k_iota = lax.broadcasted_iota(jnp.int32, d.shape, 1)
        min_d = jnp.min(d, axis=-1, keepdims=True)
        idx = jnp.min(jnp.where(d == min_d, k_iota, d.shape[1]),
                      axis=-1, keepdims=True)              # first hit on ties

        onehot = (k_iota == idx).astype(jnp.float32)       # (tm, K_p)
        q = jnp.dot(onehot, cb_ref[...], preferred_element_type=jnp.float32)

        # straight-through: forward value of z_q is exactly the codebook row
        zq_ref[...] = q
        idx_ref[...] = idx.astype(jnp.int32)

        # Lane-dense per-tile partial SSE; mask rows past the real N so the
        # padded tail never pollutes the loss.
        row = (lax.broadcasted_iota(jnp.int32, (tm, 1), 0)
               + pl.program_id(0) * tm)
        diff = (q - p) * (row < n_rows).astype(jnp.float32)
        sse_ref[...] = jnp.sum(diff * diff, axis=0, keepdims=True)[None]

    return kernel


# ----------------------------------------------------------------------------
# Parameter init (deterministic, mimicking the shapes of the torch module)
# ----------------------------------------------------------------------------
def init_params(key, input_dim, d_model, d_out, num_embeddings, n_blocks):
    params = {"blocks": []}
    for i in range(n_blocks):
        din = input_dim if i == 0 else d_model
        key, kw, kb = jax.random.split(key, 3)
        bound = 1.0 / jnp.sqrt(din)
        w = jax.random.uniform(kw, (din, d_model), jnp.float32, -bound, bound)  # W^T
        b = jax.random.uniform(kb, (1, d_model), jnp.float32, -bound, bound)
        gamma = jnp.ones((1, d_model), jnp.float32)
        beta = jnp.zeros((1, d_model), jnp.float32)
        params["blocks"].append((w, b, gamma, beta))
    key, kw, kb, kc = jax.random.split(key, 4)
    bound = 1.0 / jnp.sqrt(d_model)
    params["wp"] = jax.random.uniform(kw, (d_model, d_out), jnp.float32, -bound, bound)
    params["bp"] = jax.random.uniform(kb, (1, d_out), jnp.float32, -bound, bound)
    params["codebook"] = jax.random.uniform(
        kc, (num_embeddings, d_out), jnp.float32,
        -1.0 / num_embeddings, 1.0 / num_embeddings)
    return params


# ----------------------------------------------------------------------------
# Full forward: EncoderEnergyVQVAE(x) -> (z_q, vq_loss, encoding_indices)
# ----------------------------------------------------------------------------
def encoder_energy_vqvae(x, params, *, commitment_cost, tm=1024):
    B, L, Din = x.shape
    N = B * L
    blocks = params["blocks"]
    n_blocks = len(blocks)
    d_model = blocks[0][0].shape[1]
    K, d_out = params["codebook"].shape

    Din_p = _round_up(Din, LANE)
    Dm_p = _round_up(d_model, LANE)
    Dv_p = _round_up(d_out, LANE)
    K_p = _round_up(K, LANE)
    # TODO(synk): on v6e/v7x, contraction dims >128 could be padded to 256 to
    # fully feed the 256x256 MXU; all dims here are <=128 so 128 is optimal.

    # ---- generation-aware VMEM budget ---------------------------------------
    try:
        vmem_cap = int(pltpu.get_tpu_info().vmem_capacity_bytes)
    except Exception:
        vmem_cap = 64 * 1024 * 1024          # conservative (v7x per-TC VMEM)
    budget = int(0.75 * vmem_cap)

    def vmem_est(t):
        # streamed blocks (double-buffered by the pipeline)
        streamed = 2 * (t * Din_p * 2        # x block (bf16)
                        + t * Dv_p * 4       # z_q block (f32)
                        + t * 4              # index block (i32)
                        + Dv_p * 4)          # per-tile partial SSE (f32)
        # revisited constants (single-buffered via pl.Buffered(1))
        consts = 0
        prev = Din_p
        for _ in range(n_blocks):
            consts += prev * Dm_p * 2 + 3 * Dm_p * 4      # W (bf16) + b/g/beta (f32)
            prev = Dm_p
        consts += Dm_p * Dv_p * 2 + Dv_p * 4              # wp (bf16), bp (f32)
        consts += K_p * Dv_p * 4 + Dv_p * K_p * 2 + K_p * 4  # cb (f32), cb_t (bf16), esq
        # in-kernel intermediates (h/z, p/q, d/dots/onehot) also live in VMEM
        scratch = t * (3 * Dm_p + 3 * Dv_p + 3 * K_p) * 4
        return streamed + consts + scratch

    # ---- tile-size selection --------------------------------------------------
    tm = max(8, min(_round_up(tm, 8), _round_up(N, 8)))
    if N > 8:
        # keep >= 2 tiles so the "parallel" grid axis feeds both v7x TensorCores
        tm = min(tm, max(8, _round_up((N + 1) // 2, 8)))
    while tm > 8 and vmem_est(tm) > budget:
        tm = max(8, _round_up(tm // 2, 8))
    vmem_limit = int(min(int(0.9 * vmem_cap),
                         max(2 * vmem_est(tm), 32 * 1024 * 1024)))

    N_p = _round_up(N, tm)
    num_tiles = N_p // tm

    # ---- pad operands to lane-dense shapes (bf16 MXU feeds) ------------------
    xf = _pad2d(x.reshape(N, Din).astype(jnp.bfloat16), N_p, Din_p)

    blk_inputs = []
    prev_p = Din_p
    for (w, b, g, beta) in blocks:
        blk_inputs += [
            _pad2d(w.astype(jnp.bfloat16), prev_p, Dm_p),
            _pad2d(b.astype(jnp.float32), 1, Dm_p),
            _pad2d(g.astype(jnp.float32), 1, Dm_p),   # padded gamma lanes = 0
            _pad2d(beta.astype(jnp.float32), 1, Dm_p),
        ]
        prev_p = Dm_p

    wp = _pad2d(params["wp"].astype(jnp.bfloat16), Dm_p, Dv_p)
    bp = _pad2d(params["bp"].astype(jnp.float32), 1, Dv_p)
    cb_f32 = _pad2d(params["codebook"].astype(jnp.float32), K_p, Dv_p)  # gather
    cb_t = jnp.transpose(cb_f32).astype(jnp.bfloat16)                   # (Dv_p, K_p)
    # Hoisted codebook norms; padded rows get +1e30 so they never win argmin.
    e_sq = jnp.sum(params["codebook"].astype(jnp.float32) ** 2, axis=-1)
    e_sq = jnp.pad(e_sq, (0, K_p - K), constant_values=1e30)[None, :]   # (1, K_p)

    # ---- specs ---------------------------------------------------------------
    def build_in_specs(single_buffer_consts):
        if single_buffer_consts:
            def const_spec(shape):
                return pl.BlockSpec(shape, lambda i, _n=len(shape): (0,) * _n,
                                    pipeline_mode=pl.Buffered(1))
        else:
            def const_spec(shape):
                return pl.BlockSpec(shape, lambda i, _n=len(shape): (0,) * _n)

        specs = [pl.BlockSpec((tm, Din_p), lambda i: (i, 0))]
        prev = Din_p
        for _ in range(n_blocks):
            specs += [const_spec((prev, Dm_p)), const_spec((1, Dm_p)),
                      const_spec((1, Dm_p)), const_spec((1, Dm_p))]
            prev = Dm_p
        specs += [const_spec((Dm_p, Dv_p)), const_spec((1, Dv_p)),
                  const_spec((K_p, Dv_p)), const_spec((Dv_p, K_p)),
                  const_spec((1, K_p))]
        return specs

    out_specs = [
        pl.BlockSpec((tm, Dv_p), lambda i: (i, 0)),       # z_q (lane-dense)
        pl.BlockSpec((tm, 1), lambda i: (i, 0)),          # indices
        pl.BlockSpec((1, 1, Dv_p), lambda i: (i, 0, 0)),  # per-tile partial SSE
    ]
    out_shape = (
        jax.ShapeDtypeStruct((N_p, Dv_p), jnp.float32),
        jax.ShapeDtypeStruct((N_p, 1), jnp.int32),
        jax.ShapeDtypeStruct((num_tiles, 1, Dv_p), jnp.float32),
    )

    kernel = _make_fused_kernel(n_blocks, d_model, N)
    operands = (xf, *blk_inputs, wp, bp, cb_f32, cb_t, e_sq)

    def run(in_specs):
        outs = pl.pallas_call(
            kernel,
            out_shape=out_shape,
            grid_spec=pltpu.PrefetchScalarGridSpec(
                num_scalar_prefetch=0,
                grid=(num_tiles,),
                in_specs=in_specs,
                out_specs=out_specs,
            ),
            compiler_params=pltpu.CompilerParams(
                dimension_semantics=("parallel",),
                vmem_limit_bytes=vmem_limit,
            ),
        )(*operands)
        jax.block_until_ready(outs)
        return outs

    try:
        zq_p, idx_p, sse = run(build_in_specs(True))
    except Exception:
        # Fallback: if this JAX build rejects pl.Buffered(1) for revisited
        # constant blocks, use default (double-buffered) specs; identical math.
        zq_p, idx_p, sse = run(build_in_specs(False))

    mse = jnp.sum(sse) / jnp.float32(N * d_out)
    # forward value of q_latent_loss + commitment_cost * e_latent_loss
    vq_loss = (1.0 + commitment_cost) * mse

    z_q = zq_p[:N, :d_out].reshape(B, L, d_out)
    encoding_indices = idx_p[:N].reshape(B, L, 1)
    return z_q, vq_loss, encoding_indices


if __name__ == "__main__":
    # Small shapes consistent with the module's forward: x is (B, L, input_dim)
    B, L = 2, 8
    input_dim, d_model, d_out = 32, 32, 16
    num_embeddings = 64
    commitment_cost = 0.25
    n_blocks = 1

    key = jax.random.PRNGKey(0)
    key, kx, kp = jax.random.split(key, 3)
    x = jax.random.normal(kx, (B, L, input_dim), jnp.float32)
    params = init_params(kp, input_dim, d_model, d_out, num_embeddings, n_blocks)

    z_q, vq_loss, encoding_ind = encoder_energy_vqvae(
        x, params, commitment_cost=commitment_cost)

    jax.block_until_ready((z_q, vq_loss, encoding_ind))
    assert z_q.shape == (B, L, d_out)
    assert encoding_ind.shape == (B, L, 1)
    assert vq_loss.shape == ()
    print("KERNEL_OK")
</pallas_src>

<mosaic_0001>
module attributes {stable_mosaic.version = 11 : i64} {
  func.func @kernel(%arg0: i32, %arg1: memref<8x128xbf16, #tpu.memory_space<vmem>>, %arg2: memref<128x128xbf16, #tpu.memory_space<vmem>>, %arg3: memref<1x128xf32, #tpu.memory_space<vmem>>, %arg4: memref<1x128xf32, #tpu.memory_space<vmem>>, %arg5: memref<1x128xf32, #tpu.memory_space<vmem>>, %arg6: memref<128x128xbf16, #tpu.memory_space<vmem>>, %arg7: memref<1x128xf32, #tpu.memory_space<vmem>>, %arg8: memref<128x128xf32, #tpu.memory_space<vmem>>, %arg9: memref<128x128xbf16, #tpu.memory_space<vmem>>, %arg10: memref<1x128xf32, #tpu.memory_space<vmem>>, %arg11: memref<8x128xf32, #tpu.memory_space<vmem>>, %arg12: memref<8x1xi32, #tpu.memory_space<vmem>>, %arg13: memref<1x1x128xf32, #tpu.memory_space<vmem>>) attributes {dimension_semantics = [#tpu.dimension_semantics<parallel>], iteration_bounds = array<i64: 2>, scalar_prefetch = 0 : i64, scratch_operands = 0 : i64, tpu.core_type = #tpu.core_type<tc>, window_params = [{transform_indices = @transform_0, window_bounds = array<i64: 8, 128>}, {pipeline_mode = #tpu.pipeline_mode<synchronous>, transform_indices = @transform_1, window_bounds = array<i64: 128, 128>}, {pipeline_mode = #tpu.pipeline_mode<synchronous>, transform_indices = @transform_2, window_bounds = array<i64: 1, 128>}, {pipeline_mode = #tpu.pipeline_mode<synchronous>, transform_indices = @transform_3, window_bounds = array<i64: 1, 128>}, {pipeline_mode = #tpu.pipeline_mode<synchronous>, transform_indices = @transform_4, window_bounds = array<i64: 1, 128>}, {pipeline_mode = #tpu.pipeline_mode<synchronous>, transform_indices = @transform_5, window_bounds = array<i64: 128, 128>}, {pipeline_mode = #tpu.pipeline_mode<synchronous>, transform_indices = @transform_6, window_bounds = array<i64: 1, 128>}, {pipeline_mode = #tpu.pipeline_mode<synchronous>, transform_indices = @transform_7, window_bounds = array<i64: 128, 128>}, {pipeline_mode = #tpu.pipeline_mode<synchronous>, transform_indices = @transform_8, window_bounds = array<i64: 128, 128>}, {pipeline_mode = #tpu.pipeline_mode<synchronous>, transform_indices = @transform_9, window_bounds = array<i64: 1, 128>}, {transform_indices = @transform_10, window_bounds = array<i64: 8, 128>}, {transform_indices = @transform_11, window_bounds = array<i64: 8, 1>}, {transform_indices = @transform_12, window_bounds = array<i64: 1, 1, 128>}]} {
    %c0 = arith.constant 0 : index
    %c0_0 = arith.constant 0 : index
    %0 = vector.load %arg1[%c0, %c0_0] : memref<8x128xbf16, #tpu.memory_space<vmem>>, vector<8x128xbf16>
    %c0_1 = arith.constant 0 : index
    %c0_2 = arith.constant 0 : index
    %1 = vector.load %arg2[%c0_1, %c0_2] : memref<128x128xbf16, #tpu.memory_space<vmem>>, vector<128x128xbf16>
    %cst = arith.constant dense<0.000000e+00> : vector<8x128xf32>
    %2 = tpu.matmul %0, %1, %cst {dimension_numbers = #tpu.dot_dimension_numbers<[1], [0], [0], [1], [0, 0, 1, 1], [], []>} : vector<8x128xbf16>, vector<128x128xbf16>, vector<8x128xf32> -> vector<8x128xf32>
    %c0_3 = arith.constant 0 : index
    %c0_4 = arith.constant 0 : index
    %3 = vector.load %arg3[%c0_3, %c0_4] : memref<1x128xf32, #tpu.memory_space<vmem>>, vector<1x128xf32>
    %4 = vector.broadcast %3 : vector<1x128xf32> to vector<8x128xf32>
    %5 = arith.addf %2, %4 : vector<8x128xf32>
    %cst_5 = arith.constant 0.000000e+00 : f32
    %6 = vector.broadcast %cst_5 : f32 to vector<8x128xf32>
    %7 = arith.maximumf %5, %6 : vector<8x128xf32>
    %cst_6 = arith.constant dense<0.000000e+00> : vector<8xf32>
    %8 = vector.multi_reduction <add>, %7, %cst_6 [1] : vector<8x128xf32> to vector<8xf32>
    %9 = vector.shape_cast %8 : vector<8xf32> to vector<8x1xf32>
    %cst_7 = arith.constant 3.125000e-02 : f32
    %10 = vector.broadcast %cst_7 : f32 to vector<8x1xf32>
    %11 = arith.mulf %9, %10 : vector<8x1xf32>
    %12 = arith.mulf %7, %7 : vector<8x128xf32>
    %cst_8 = arith.constant dense<0.000000e+00> : vector<8xf32>
    %13 = vector.multi_reduction <add>, %12, %cst_8 [1] : vector<8x128xf32> to vector<8xf32>
    %14 = vector.shape_cast %13 : vector<8xf32> to vector<8x1xf32>
    %cst_9 = arith.constant 3.125000e-02 : f32
    %15 = vector.broadcast %cst_9 : f32 to vector<8x1xf32>
    %16 = arith.mulf %14, %15 : vector<8x1xf32>
    %17 = arith.mulf %11, %11 : vector<8x1xf32>
    %18 = arith.subf %16, %17 : vector<8x1xf32>
    %19 = vector.broadcast %11 : vector<8x1xf32> to vector<8x128xf32>
    %20 = arith.subf %7, %19 : vector<8x128xf32>
    %cst_10 = arith.constant 9.99999974E-6 : f32
    %21 = vector.broadcast %cst_10 : f32 to vector<8x1xf32>
    %22 = arith.addf %18, %21 : vector<8x1xf32>
    %23 = math.rsqrt %22 : vector<8x1xf32>
    %24 = vector.broadcast %23 : vector<8x1xf32> to vector<8x128xf32>
    %25 = arith.mulf %20, %24 : vector<8x128xf32>
    %c0_11 = arith.constant 0 : index
    %c0_12 = arith.constant 0 : index
    %26 = vector.load %arg4[%c0_11, %c0_12] : memref<1x128xf32, #tpu.memory_space<vmem>>, vector<1x128xf32>
    %27 = vector.broadcast %26 : vector<1x128xf32> to vector<8x128xf32>
    %28 = arith.mulf %25, %27 : vector<8x128xf32>
    %c0_13 = arith.constant 0 : index
    %c0_14 = arith.constant 0 : index
    %29 = vector.load %arg5[%c0_13, %c0_14] : memref<1x128xf32, #tpu.memory_space<vmem>>, vector<1x128xf32>
    %30 = vector.broadcast %29 : vector<1x128xf32> to vector<8x128xf32>
    %31 = arith.addf %28, %30 : vector<8x128xf32>
    %32 = arith.truncf %31 : vector<8x128xf32> to vector<8x128xbf16>
    %c0_15 = arith.constant 0 : index
    %c0_16 = arith.constant 0 : index
    %33 = vector.load %arg6[%c0_15, %c0_16] : memref<128x128xbf16, #tpu.memory_space<vmem>>, vector<128x128xbf16>
    %cst_17 = arith.constant dense<0.000000e+00> : vector<8x128xf32>
    %34 = tpu.matmul %32, %33, %cst_17 {dimension_numbers = #tpu.dot_dimension_numbers<[1], [0], [0], [1], [0, 0, 1, 1], [], []>} : vector<8x128xbf16>, vector<128x128xbf16>, vector<8x128xf32> -> vector<8x128xf32>
    %c0_18 = arith.constant 0 : index
    %c0_19 = arith.constant 0 : index
    %35 = vector.load %arg7[%c0_18, %c0_19] : memref<1x128xf32, #tpu.memory_space<vmem>>, vector<1x128xf32>
    %36 = vector.broadcast %35 : vector<1x128xf32> to vector<8x128xf32>
    %37 = arith.addf %34, %36 : vector<8x128xf32>
    %38 = arith.mulf %37, %37 : vector<8x128xf32>
    %cst_20 = arith.constant dense<0.000000e+00> : vector<8xf32>
    %39 = vector.multi_reduction <add>, %38, %cst_20 [1] : vector<8x128xf32> to vector<8xf32>
    %40 = vector.shape_cast %39 : vector<8xf32> to vector<8x1xf32>
    %41 = arith.truncf %37 : vector<8x128xf32> to vector<8x128xbf16>
    %c0_21 = arith.constant 0 : index
    %c0_22 = arith.constant 0 : index
    %42 = vector.load %arg9[%c0_21, %c0_22] : memref<128x128xbf16, #tpu.memory_space<vmem>>, vector<128x128xbf16>
    %cst_23 = arith.constant dense<0.000000e+00> : vector<8x128xf32>
    %43 = tpu.matmul %41, %42, %cst_23 {dimension_numbers = #tpu.dot_dimension_numbers<[1], [0], [0], [1], [0, 0, 1, 1], [], []>} : vector<8x128xbf16>, vector<128x128xbf16>, vector<8x128xf32> -> vector<8x128xf32>
    %c0_24 = arith.constant 0 : index
    %c0_25 = arith.constant 0 : index
    %44 = vector.load %arg10[%c0_24, %c0_25] : memref<1x128xf32, #tpu.memory_space<vmem>>, vector<1x128xf32>
    %45 = vector.broadcast %40 : vector<8x1xf32> to vector<8x128xf32>
    %46 = vector.broadcast %44 : vector<1x128xf32> to vector<8x128xf32>
    %47 = arith.addf %45, %46 : vector<8x128xf32>
    %cst_26 = arith.constant 2.000000e+00 : f32
    %48 = vector.broadcast %cst_26 : f32 to vector<8x128xf32>
    %49 = arith.mulf %48, %43 : vector<8x128xf32>
    %50 = arith.subf %47, %49 : vector<8x128xf32>
    %51 = tpu.iota {dimensions = array<i32: 1>} : vector<8x128xi32>
    %cst_27 = arith.constant dense<0x7F800000> : vector<8xf32>
    %52 = vector.multi_reduction <minimumf>, %50, %cst_27 [1] : vector<8x128xf32> to vector<8xf32>
    %53 = vector.shape_cast %52 : vector<8xf32> to vector<8x1xf32>
    %54 = vector.broadcast %53 : vector<8x1xf32> to vector<8x128xf32>
    %55 = arith.cmpf oeq, %50, %54 : vector<8x128xf32>
    %c128_i32 = arith.constant 128 : i32
    %56 = vector.broadcast %c128_i32 : i32 to vector<8x128xi32>
    %57 = arith.select %55, %51, %56 : vector<8x128xi1>, vector<8x128xi32>
    %cst_28 = arith.constant dense<2147483647> : vector<8xi32>
    %58 = vector.multi_reduction <minsi>, %57, %cst_28 [1] : vector<8x128xi32> to vector<8xi32>
    %59 = vector.shape_cast %58 : vector<8xi32> to vector<8x1xi32>
    %60 = vector.broadcast %59 : vector<8x1xi32> to vector<8x128xi32>
    %61 = arith.cmpi eq, %51, %60 : vector<8x128xi32>
    %62 = arith.extui %61 : vector<8x128xi1> to vector<8x128xi32>
    %63 = arith.sitofp %62 : vector<8x128xi32> to vector<8x128xf32>
    %c0_29 = arith.constant 0 : index
    %c0_30 = arith.constant 0 : index
    %64 = vector.load %arg8[%c0_29, %c0_30] : memref<128x128xf32, #tpu.memory_space<vmem>>, vector<128x128xf32>
    %cst_31 = arith.constant dense<0.000000e+00> : vector<8x128xf32>
    %65 = tpu.matmul %63, %64, %cst_31 {dimension_numbers = #tpu.dot_dimension_numbers<[1], [0], [0], [1], [0, 0, 1, 1], [], []>} : vector<8x128xf32>, vector<128x128xf32>, vector<8x128xf32> -> vector<8x128xf32>
    %c0_32 = arith.constant 0 : index
    %c0_33 = arith.constant 0 : index
    %66 = vector.load %arg11[%c0_32, %c0_33] : memref<8x128xf32, #tpu.memory_space<vmem>>, vector<8x128xf32>
    tpu.vector_store %arg11[%c0_32, %c0_33], %65 {strides = array<i32>} : memref<8x128xf32, #tpu.memory_space<vmem>>, vector<8x128xf32>,
    %c0_34 = arith.constant 0 : index
    %c0_35 = arith.constant 0 : index
    %67 = vector.load %arg12[%c0_34, %c0_35] : memref<8x1xi32, #tpu.memory_space<vmem>>, vector<8x1xi32>
    tpu.vector_store %arg12[%c0_34, %c0_35], %59 {strides = array<i32>} : memref<8x1xi32, #tpu.memory_space<vmem>>, vector<8x1xi32>,
    %68 = tpu.iota {dimensions = array<i32: 0>} : vector<8x1xi32>
    %c8_i32 = arith.constant 8 : i32
    %69 = arith.muli %arg0, %c8_i32 : i32
    %70 = vector.broadcast %69 : i32 to vector<8x1xi32>
    %71 = arith.addi %68, %70 : vector<8x1xi32>
    %72 = arith.subf %65, %37 : vector<8x128xf32>
    %c16_i32 = arith.constant 16 : i32
    %73 = vector.broadcast %c16_i32 : i32 to vector<8x1xi32>
    %74 = arith.cmpi slt, %71, %73 : vector<8x1xi32>
    %75 = arith.extui %74 : vector<8x1xi1> to vector<8x1xi32>
    %76 = arith.sitofp %75 : vector<8x1xi32> to vector<8x1xf32>
    %77 = vector.broadcast %76 : vector<8x1xf32> to vector<8x128xf32>
    %78 = arith.mulf %72, %77 : vector<8x128xf32>
    %79 = arith.mulf %78, %78 : vector<8x128xf32>
    %cst_36 = arith.constant dense<0.000000e+00> : vector<128xf32>
    %80 = vector.multi_reduction <add>, %79, %cst_36 [0] : vector<8x128xf32> to vector<128xf32>
    %81 = vector.shape_cast %80 : vector<128xf32> to vector<1x128xf32>
    %82 = vector.shape_cast %81 : vector<1x128xf32> to vector<1x1x128xf32>
    %c0_37 = arith.constant 0 : index
    %c0_38 = arith.constant 0 : index
    %c0_39 = arith.constant 0 : index
    %83 = vector.load %arg13[%c0_37, %c0_38, %c0_39] : memref<1x1x128xf32, #tpu.memory_space<vmem>>, vector<1x1x128xf32>
    tpu.vector_store %arg13[%c0_37, %c0_38, %c0_39], %82 {strides = array<i32>} : memref<1x1x128xf32, #tpu.memory_space<vmem>>, vector<1x1x128xf32>,
    return
  }
  func.func @transform_0(%arg0: i32) -> (i32, i32) {
    %c0_i32 = arith.constant 0 : i32
    %c0_i32_0 = arith.constant 0 : i32
    return %arg0, %c0_i32 : i32, i32
  }
  func.func @transform_1(%arg0: i32) -> (i32, i32) {
    %c0_i32 = arith.constant 0 : i32
    %c0_i32_0 = arith.constant 0 : i32
    %c0_i32_1 = arith.constant 0 : i32
    return %c0_i32, %c0_i32_0 : i32, i32
  }
  func.func @transform_2(%arg0: i32) -> (i32, i32) {
    %c0_i32 = arith.constant 0 : i32
    %c0_i32_0 = arith.constant 0 : i32
    %c0_i32_1 = arith.constant 0 : i32
    return %c0_i32, %c0_i32_0 : i32, i32
  }
  func.func @transform_3(%arg0: i32) -> (i32, i32) {
    %c0_i32 = arith.constant 0 : i32
    %c0_i32_0 = arith.constant 0 : i32
    %c0_i32_1 = arith.constant 0 : i32
    return %c0_i32, %c0_i32_0 : i32, i32
  }
  func.func @transform_4(%arg0: i32) -> (i32, i32) {
    %c0_i32 = arith.constant 0 : i32
    %c0_i32_0 = arith.constant 0 : i32
    %c0_i32_1 = arith.constant 0 : i32
    return %c0_i32, %c0_i32_0 : i32, i32
  }
  func.func @transform_5(%arg0: i32) -> (i32, i32) {
    %c0_i32 = arith.constant 0 : i32
    %c0_i32_0 = arith.constant 0 : i32
    %c0_i32_1 = arith.constant 0 : i32
    return %c0_i32, %c0_i32_0 : i32, i32
  }
  func.func @transform_6(%arg0: i32) -> (i32, i32) {
    %c0_i32 = arith.constant 0 : i32
    %c0_i32_0 = arith.constant 0 : i32
    %c0_i32_1 = arith.constant 0 : i32
    return %c0_i32, %c0_i32_0 : i32, i32
  }
  func.func @transform_7(%arg0: i32) -> (i32, i32) {
    %c0_i32 = arith.constant 0 : i32
    %c0_i32_0 = arith.constant 0 : i32
    %c0_i32_1 = arith.constant 0 : i32
    return %c0_i32, %c0_i32_0 : i32, i32
  }
  func.func @transform_8(%arg0: i32) -> (i32, i32) {
    %c0_i32 = arith.constant 0 : i32
    %c0_i32_0 = arith.constant 0 : i32
    %c0_i32_1 = arith.constant 0 : i32
    return %c0_i32, %c0_i32_0 : i32, i32
  }
  func.func @transform_9(%arg0: i32) -> (i32, i32) {
    %c0_i32 = arith.constant 0 : i32
    %c0_i32_0 = arith.constant 0 : i32
    %c0_i32_1 = arith.constant 0 : i32
    return %c0_i32, %c0_i32_0 : i32, i32
  }
  func.func @transform_10(%arg0: i32) -> (i32, i32) {
    %c0_i32 = arith.constant 0 : i32
    %c0_i32_0 = arith.constant 0 : i32
    return %arg0, %c0_i32 : i32, i32
  }
  func.func @transform_11(%arg0: i32) -> (i32, i32) {
    %c0_i32 = arith.constant 0 : i32
    %c0_i32_0 = arith.constant 0 : i32
    return %arg0, %c0_i32 : i32, i32
  }
  func.func @transform_12(%arg0: i32) -> (i32, i32, i32) {
    %c0_i32 = arith.constant 0 : i32
    %c0_i32_0 = arith.constant 0 : i32
    %c0_i32_1 = arith.constant 0 : i32
    return %arg0, %c0_i32, %c0_i32_0 : i32, i32, i32
  }
}

module attributes {stable_mosaic.version = 11 : i64} {
  func.func @kernel(%arg0: i32, %arg1: memref<8x128xbf16, #tpu.memory_space<vmem>>, %arg2: memref<128x128xbf16, #tpu.memory_space<vmem>>, %arg3: memref<1x128xf32, #tpu.memory_space<vmem>>, %arg4: memref<1x128xf32, #tpu.memory_space<vmem>>, %arg5: memref<1x128xf32, #tpu.memory_space<vmem>>, %arg6: memref<128x128xbf16, #tpu.memory_space<vmem>>, %arg7: memref<1x128xf32, #tpu.memory_space<vmem>>, %arg8: memref<128x128xf32, #tpu.memory_space<vmem>>, %arg9: memref<128x128xbf16, #tpu.memory_space<vmem>>, %arg10: memref<1x128xf32, #tpu.memory_space<vmem>>, %arg11: memref<8x128xf32, #tpu.memory_space<vmem>>, %arg12: memref<8x1xi32, #tpu.memory_space<vmem>>, %arg13: memref<1x1x128xf32, #tpu.memory_space<vmem>>) attributes {dimension_semantics = [#tpu.dimension_semantics<parallel>], iteration_bounds = array<i64: 2>, scalar_prefetch = 0 : i64, scratch_operands = 0 : i64, tpu.core_type = #tpu.core_type<tc>, window_params = [{transform_indices = @transform_0, window_bounds = array<i64: 8, 128>}, {pipeline_mode = #tpu.pipeline_mode<synchronous>, transform_indices = @transform_1, window_bounds = array<i64: 128, 128>}, {pipeline_mode = #tpu.pipeline_mode<synchronous>, transform_indices = @transform_2, window_bounds = array<i64: 1, 128>}, {pipeline_mode = #tpu.pipeline_mode<synchronous>, transform_indices = @transform_3, window_bounds = array<i64: 1, 128>}, {pipeline_mode = #tpu.pipeline_mode<synchronous>, transform_indices = @transform_4, window_bounds = array<i64: 1, 128>}, {pipeline_mode = #tpu.pipeline_mode<synchronous>, transform_indices = @transform_5, window_bounds = array<i64: 128, 128>}, {pipeline_mode = #tpu.pipeline_mode<synchronous>, transform_indices = @transform_6, window_bounds = array<i64: 1, 128>}, {pipeline_mode = #tpu.pipeline_mode<synchronous>, transform_indices = @transform_7, window_bounds = array<i64: 128, 128>}, {pipeline_mode = #tpu.pipeline_mode<synchronous>, transform_indices = @transform_8, window_bounds = array<i64: 128, 128>}, {pipeline_mode = #tpu.pipeline_mode<synchronous>, transform_indices = @transform_9, window_bounds = array<i64: 1, 128>}, {transform_indices = @transform_10, window_bounds = array<i64: 8, 128>}, {transform_indices = @transform_11, window_bounds = array<i64: 8, 1>}, {transform_indices = @transform_12, window_bounds = array<i64: 1, 1, 128>}]} {
    %c0 = arith.constant 0 : index
    %c0_0 = arith.constant 0 : index
    %0 = vector.load %arg1[%c0, %c0_0] : memref<8x128xbf16, #tpu.memory_space<vmem>>, vector<8x128xbf16>
    %c0_1 = arith.constant 0 : index
    %c0_2 = arith.constant 0 : index
    %1 = vector.load %arg2[%c0_1, %c0_2] : memref<128x128xbf16, #tpu.memory_space<vmem>>, vector<128x128xbf16>
    %cst = arith.constant dense<0.000000e+00> : vector<8x128xf32>
    %2 = tpu.matmul %0, %1, %cst {dimension_numbers = #tpu.dot_dimension_numbers<[1], [0], [0], [1], [0, 0, 1, 1], [], []>} : vector<8x128xbf16>, vector<128x128xbf16>, vector<8x128xf32> -> vector<8x128xf32>
    %c0_3 = arith.constant 0 : index
    %c0_4 = arith.constant 0 : index
    %3 = vector.load %arg3[%c0_3, %c0_4] : memref<1x128xf32, #tpu.memory_space<vmem>>, vector<1x128xf32>
    %4 = vector.broadcast %3 : vector<1x128xf32> to vector<8x128xf32>
    %5 = arith.addf %2, %4 : vector<8x128xf32>
    %cst_5 = arith.constant 0.000000e+00 : f32
    %6 = vector.broadcast %cst_5 : f32 to vector<8x128xf32>
    %7 = arith.maximumf %5, %6 : vector<8x128xf32>
    %cst_6 = arith.constant dense<0.000000e+00> : vector<8xf32>
    %8 = vector.multi_reduction <add>, %7, %cst_6 [1] : vector<8x128xf32> to vector<8xf32>
    %9 = vector.shape_cast %8 : vector<8xf32> to vector<8x1xf32>
    %cst_7 = arith.constant 3.125000e-02 : f32
    %10 = vector.broadcast %cst_7 : f32 to vector<8x1xf32>
    %11 = arith.mulf %9, %10 : vector<8x1xf32>
    %12 = arith.mulf %7, %7 : vector<8x128xf32>
    %cst_8 = arith.constant dense<0.000000e+00> : vector<8xf32>
    %13 = vector.multi_reduction <add>, %12, %cst_8 [1] : vector<8x128xf32> to vector<8xf32>
    %14 = vector.shape_cast %13 : vector<8xf32> to vector<8x1xf32>
    %cst_9 = arith.constant 3.125000e-02 : f32
    %15 = vector.broadcast %cst_9 : f32 to vector<8x1xf32>
    %16 = arith.mulf %14, %15 : vector<8x1xf32>
    %17 = arith.mulf %11, %11 : vector<8x1xf32>
    %18 = arith.subf %16, %17 : vector<8x1xf32>
    %19 = vector.broadcast %11 : vector<8x1xf32> to vector<8x128xf32>
    %20 = arith.subf %7, %19 : vector<8x128xf32>
    %cst_10 = arith.constant 9.99999974E-6 : f32
    %21 = vector.broadcast %cst_10 : f32 to vector<8x1xf32>
    %22 = arith.addf %18, %21 : vector<8x1xf32>
    %23 = math.rsqrt %22 : vector<8x1xf32>
    %24 = vector.broadcast %23 : vector<8x1xf32> to vector<8x128xf32>
    %25 = arith.mulf %20, %24 : vector<8x128xf32>
    %c0_11 = arith.constant 0 : index
    %c0_12 = arith.constant 0 : index
    %26 = vector.load %arg4[%c0_11, %c0_12] : memref<1x128xf32, #tpu.memory_space<vmem>>, vector<1x128xf32>
    %27 = vector.broadcast %26 : vector<1x128xf32> to vector<8x128xf32>
    %28 = arith.mulf %25, %27 : vector<8x128xf32>
    %c0_13 = arith.constant 0 : index
    %c0_14 = arith.constant 0 : index
    %29 = vector.load %arg5[%c0_13, %c0_14] : memref<1x128xf32, #tpu.memory_space<vmem>>, vector<1x128xf32>
    %30 = vector.broadcast %29 : vector<1x128xf32> to vector<8x128xf32>
    %31 = arith.addf %28, %30 : vector<8x128xf32>
    %32 = arith.truncf %31 : vector<8x128xf32> to vector<8x128xbf16>
    %c0_15 = arith.constant 0 : index
    %c0_16 = arith.constant 0 : index
    %33 = vector.load %arg6[%c0_15, %c0_16] : memref<128x128xbf16, #tpu.memory_space<vmem>>, vector<128x128xbf16>
    %cst_17 = arith.constant dense<0.000000e+00> : vector<8x128xf32>
    %34 = tpu.matmul %32, %33, %cst_17 {dimension_numbers = #tpu.dot_dimension_numbers<[1], [0], [0], [1], [0, 0, 1, 1], [], []>} : vector<8x128xbf16>, vector<128x128xbf16>, vector<8x128xf32> -> vector<8x128xf32>
    %c0_18 = arith.constant 0 : index
    %c0_19 = arith.constant 0 : index
    %35 = vector.load %arg7[%c0_18, %c0_19] : memref<1x128xf32, #tpu.memory_space<vmem>>, vector<1x128xf32>
    %36 = vector.broadcast %35 : vector<1x128xf32> to vector<8x128xf32>
    %37 = arith.addf %34, %36 : vector<8x128xf32>
    %38 = arith.mulf %37, %37 : vector<8x128xf32>
    %cst_20 = arith.constant dense<0.000000e+00> : vector<8xf32>
    %39 = vector.multi_reduction <add>, %38, %cst_20 [1] : vector<8x128xf32> to vector<8xf32>
    %40 = vector.shape_cast %39 : vector<8xf32> to vector<8x1xf32>
    %41 = arith.truncf %37 : vector<8x128xf32> to vector<8x128xbf16>
    %c0_21 = arith.constant 0 : index
    %c0_22 = arith.constant 0 : index
    %42 = vector.load %arg9[%c0_21, %c0_22] : memref<128x128xbf16, #tpu.memory_space<vmem>>, vector<128x128xbf16>
    %cst_23 = arith.constant dense<0.000000e+00> : vector<8x128xf32>
    %43 = tpu.matmul %41, %42, %cst_23 {dimension_numbers = #tpu.dot_dimension_numbers<[1], [0], [0], [1], [0, 0, 1, 1], [], []>} : vector<8x128xbf16>, vector<128x128xbf16>, vector<8x128xf32> -> vector<8x128xf32>
    %c0_24 = arith.constant 0 : index
    %c0_25 = arith.constant 0 : index
    %44 = vector.load %arg10[%c0_24, %c0_25] : memref<1x128xf32, #tpu.memory_space<vmem>>, vector<1x128xf32>
    %45 = vector.broadcast %40 : vector<8x1xf32> to vector<8x128xf32>
    %46 = vector.broadcast %44 : vector<1x128xf32> to vector<8x128xf32>
    %47 = arith.addf %45, %46 : vector<8x128xf32>
    %cst_26 = arith.constant 2.000000e+00 : f32
    %48 = vector.broadcast %cst_26 : f32 to vector<8x128xf32>
    %49 = arith.mulf %48, %43 : vector<8x128xf32>
    %50 = arith.subf %47, %49 : vector<8x128xf32>
    %51 = tpu.iota {dimensions = array<i32: 1>} : vector<8x128xi32>
    %cst_27 = arith.constant dense<0x7F800000> : vector<8xf32>
    %52 = vector.multi_reduction <minimumf>, %50, %cst_27 [1] : vector<8x128xf32> to vector<8xf32>
    %53 = vector.shape_cast %52 : vector<8xf32> to vector<8x1xf32>
    %54 = vector.broadcast %53 : vector<8x1xf32> to vector<8x128xf32>
    %55 = arith.cmpf oeq, %50, %54 : vector<8x128xf32>
    %c128_i32 = arith.constant 128 : i32
    %56 = vector.broadcast %c128_i32 : i32 to vector<8x128xi32>
    %57 = arith.select %55, %51, %56 : vector<8x128xi1>, vector<8x128xi32>
    %cst_28 = arith.constant dense<2147483647> : vector<8xi32>
    %58 = vector.multi_reduction <minsi>, %57, %cst_28 [1] : vector<8x128xi32> to vector<8xi32>
    %59 = vector.shape_cast %58 : vector<8xi32> to vector<8x1xi32>
    %60 = vector.broadcast %59 : vector<8x1xi32> to vector<8x128xi32>
    %61 = arith.cmpi eq, %51, %60 : vector<8x128xi32>
    %62 = arith.extui %61 : vector<8x128xi1> to vector<8x128xi32>
    %63 = arith.sitofp %62 : vector<8x128xi32> to vector<8x128xf32>
    %c0_29 = arith.constant 0 : index
    %c0_30 = arith.constant 0 : index
    %64 = vector.load %arg8[%c0_29, %c0_30] : memref<128x128xf32, #tpu.memory_space<vmem>>, vector<128x128xf32>
    %cst_31 = arith.constant dense<0.000000e+00> : vector<8x128xf32>
    %65 = tpu.matmul %63, %64, %cst_31 {dimension_numbers = #tpu.dot_dimension_numbers<[1], [0], [0], [1], [0, 0, 1, 1], [], []>} : vector<8x128xf32>, vector<128x128xf32>, vector<8x128xf32> -> vector<8x128xf32>
    %c0_32 = arith.constant 0 : index
    %c0_33 = arith.constant 0 : index
    %66 = vector.load %arg11[%c0_32, %c0_33] : memref<8x128xf32, #tpu.memory_space<vmem>>, vector<8x128xf32>
    tpu.vector_store %arg11[%c0_32, %c0_33], %65 {strides = array<i32>} : memref<8x128xf32, #tpu.memory_space<vmem>>, vector<8x128xf32>,
    %c0_34 = arith.constant 0 : index
    %c0_35 = arith.constant 0 : index
    %67 = vector.load %arg12[%c0_34, %c0_35] : memref<8x1xi32, #tpu.memory_space<vmem>>, vector<8x1xi32>
    tpu.vector_store %arg12[%c0_34, %c0_35], %59 {strides = array<i32>} : memref<8x1xi32, #tpu.memory_space<vmem>>, vector<8x1xi32>,
    %68 = tpu.iota {dimensions = array<i32: 0>} : vector<8x1xi32>
    %c8_i32 = arith.constant 8 : i32
    %69 = arith.muli %arg0, %c8_i32 : i32
    %70 = vector.broadcast %69 : i32 to vector<8x1xi32>
    %71 = arith.addi %68, %70 : vector<8x1xi32>
    %72 = arith.subf %65, %37 : vector<8x128xf32>
    %c16_i32 = arith.constant 16 : i32
    %73 = vector.broadcast %c16_i32 : i32 to vector<8x1xi32>
    %74 = arith.cmpi slt, %71, %73 : vector<8x1xi32>
    %75 = arith.extui %74 : vector<8x1xi1> to vector<8x1xi32>
    %76 = arith.sitofp %75 : vector<8x1xi32> to vector<8x1xf32>
    %77 = vector.broadcast %76 : vector<8x1xf32> to vector<8x128xf32>
    %78 = arith.mulf %72, %77 : vector<8x128xf32>
    %79 = arith.mulf %78, %78 : vector<8x128xf32>
    %cst_36 = arith.constant dense<0.000000e+00> : vector<128xf32>
    %80 = vector.multi_reduction <add>, %79, %cst_36 [0] : vector<8x128xf32> to vector<128xf32>
    %81 = vector.shape_cast %80 : vector<128xf32> to vector<1x128xf32>
    %82 = vector.shape_cast %81 : vector<1x128xf32> to vector<1x1x128xf32>
    %c0_37 = arith.constant 0 : index
    %c0_38 = arith.constant 0 : index
    %c0_39 = arith.constant 0 : index
    %83 = vector.load %arg13[%c0_37, %c0_38, %c0_39] : memref<1x1x128xf32, #tpu.memory_space<vmem>>, vector<1x1x128xf32>
    tpu.vector_store %arg13[%c0_37, %c0_38, %c0_39], %82 {strides = array<i32>} : memref<1x1x128xf32, #tpu.memory_space<vmem>>, vector<1x1x128xf32>,
    return
  }
  func.func @transform_0(%arg0: i32) -> (i32, i32) {
    %c0_i32 = arith.constant 0 : i32
    %c0_i32_0 = arith.constant 0 : i32
    return %arg0, %c0_i32 : i32, i32
  }
  func.func @transform_1(%arg0: i32) -> (i32, i32) {
    %c0_i32 = arith.constant 0 : i32
    %c0_i32_0 = arith.constant 0 : i32
    %c0_i32_1 = arith.constant 0 : i32
    return %c0_i32, %c0_i32_0 : i32, i32
  }
  func.func @transform_2(%arg0: i32) -> (i32, i32) {
    %c0_i32 = arith.constant 0 : i32
    %c0_i32_0 = arith.constant 0 : i32
    %c0_i32_1 = arith.constant 0 : i32
    return %c0_i32, %c0_i32_0 : i32, i32
  }
  func.func @transform_3(%arg0: i32) -> (i32, i32) {
    %c0_i32 = arith.constant 0 : i32
    %c0_i32_0 = arith.constant 0 : i32
    %c0_i32_1 = arith.constant 0 : i32
    return %c0_i32, %c0_i32_0 : i32, i32
  }
  func.func @transform_4(%arg0: i32) -> (i32, i32) {
    %c0_i32 = arith.constant 0 : i32
    %c0_i32_0 = arith.constant 0 : i32
    %c0_i32_1 = arith.constant 0 : i32
    return %c0_i32, %c0_i32_0 : i32, i32
  }
  func.func @transform_5(%arg0: i32) -> (i32, i32) {
    %c0_i32 = arith.constant 0 : i32
    %c0_i32_0 = arith.constant 0 : i32
    %c0_i32_1 = arith.constant 0 : i32
    return %c0_i32, %c0_i32_0 : i32, i32
  }
  func.func @transform_6(%arg0: i32) -> (i32, i32) {
    %c0_i32 = arith.constant 0 : i32
    %c0_i32_0 = arith.constant 0 : i32
    %c0_i32_1 = arith.constant 0 : i32
    return %c0_i32, %c0_i32_0 : i32, i32
  }
  func.func @transform_7(%arg0: i32) -> (i32, i32) {
    %c0_i32 = arith.constant 0 : i32
    %c0_i32_0 = arith.constant 0 : i32
    %c0_i32_1 = arith.constant 0 : i32
    return %c0_i32, %c0_i32_0 : i32, i32
  }
  func.func @transform_8(%arg0: i32) -> (i32, i32) {
    %c0_i32 = arith.constant 0 : i32
    %c0_i32_0 = arith.constant 0 : i32
    %c0_i32_1 = arith.constant 0 : i32
    return %c0_i32, %c0_i32_0 : i32, i32
  }
  func.func @transform_9(%arg0: i32) -> (i32, i32) {
    %c0_i32 = arith.constant 0 : i32
    %c0_i32_0 = arith.constant 0 : i32
    %c0_i32_1 = arith.constant 0 : i32
    return %c0_i32, %c0_i32_0 : i32, i32
  }
  func.func @transform_10(%arg0: i32) -> (i32, i32) {
    %c0_i32 = arith.constant 0 : i32
    %c0_i32_0 = arith.constant 0 : i32
    return %arg0, %c0_i32 : i32, i32
  }
  func.func @transform_11(%arg0: i32) -> (i32, i32) {
    %c0_i32 = arith.constant 0 : i32
    %c0_i32_0 = arith.constant 0 : i32
    return %arg0, %c0_i32 : i32, i32
  }
  func.func @transform_12(%arg0: i32) -> (i32, i32, i32) {
    %c0_i32 = arith.constant 0 : i32
    %c0_i32_0 = arith.constant 0 : i32
    %c0_i32_1 = arith.constant 0 : i32
    return %arg0, %c0_i32, %c0_i32_0 : i32, i32, i32
  }
}

</mosaic_0001>

<bundles_post_ra>
// kernel: tpu_custom_call.1
= control target key start
LH: loop header
LB: loop body
LE: loop exit
PB: predicated region body
PF: predicated region fallthrough
CT: control target
= control target key end

     0   :  { %s2173_s0 = inlined_call_operand.hbm [shape: bf16[16,128], index: 0, kind: input, shape index: {}]   ;;  %s2174_s1 = inlined_call_operand.hbm [shape: bf16[128,128], index: 1, kind: input, shape index: {}]   ;;  %s2175_s2 = inlined_call_operand.vmem [shape: f32[1,128], index: 2, kind: input, shape index: {}]   ;;  %s2176_s3 = inlined_call_operand.vmem [shape: f32[1,128], index: 3, kind: input, shape index: {}]   ;;  %s2177_s4 = inlined_call_operand.vmem [shape: f32[1,128], index: 4, kind: input, shape index: {}]   ;;  %s2178_s5 = inlined_call_operand.hbm [shape: bf16[128,128], index: 5, kind: input, shape index: {}]   ;;  %s2179_s6 = inlined_call_operand.vmem [shape: f32[1,128], index: 6, kind: input, shape index: {}]   ;;  %s2180_s7 = inlined_call_operand.hbm [shape: f32[128,128], index: 7, kind: input, shape index: {}]   ;;  %s2181_s8 = inlined_call_operand.hbm [shape: bf16[128,128], index: 8, kind: input, shape index: {}]   ;;  %s2182_s9 = inlined_call_operand.vmem [shape: f32[1,128], index: 9, kind: input, shape index: {}]   ;;  %s2183_s10 = inlined_call_operand.hbm [shape: f32[16,128], index: 10, kind: output, shape index: {0}]   ;;  %s2184_s11 = inlined_call_operand.vmem [shape: s32[16,1], index: 11, kind: output, shape index: {1}]   ;;  %s2185_s12 = inlined_call_operand.hbm [shape: f32[2,1,128], index: 12, kind: output, shape index: {2}]  }
   0x1   :  { %2193 = sst [smem:[#allocation22_spill]] %s2174_s1 }
   0x2   :  { %2194 = sst [smem:[#allocation23_spill]] %s2178_s5 }
   0x3   :  { %2195 = sst [smem:[#allocation24_spill]] %s2180_s7 }
   0x4   :  { %2196 = sst [smem:[#allocation25_spill]] %s2181_s8 }
   0x5   :  { %18 = vsyncpa [#allocation3], 0 }
   0x6   :  { %20 = vsyncpa [#allocation3 + $0x1], 0 }
   0x7   :  { %21 = vsyncpa [#allocation6], 0 }
   0x8   :  { %22 = vsyncpa [#allocation9], 0 }
   0x9   :  { %23 = vsyncpa [#allocation4], 0 }
   0xa   :  { %25 = vsyncpa [#allocation4 + $0x1], 0 }
   0xb   :  { %26 = vsyncpa [#allocation13], 0 }
   0xc   :  { %28 = vsyncpa [#allocation13 + $0x1], 0  ;;  %s1842_s21 = smov 0   ;;  %s1844_s22 = smov 0  }
   0xd   :  { %s1846_s23 = smov 0   ;;  %s1848_s24 = smov 0  }
   0xe LB: > { %2197 = sst [smem:[#allocation19_spill]] %s1757_s23  ;;  %s1763_s25 = smov [#allocation5]   ;;  %s1761_s24 = sphi %s1848_s24, %s2220_s24   ;;  %s1757_s23 = sphi %s1846_s23, %s2222_s23   ;;  %s1753_s22 = sphi %s1844_s22, %s2224_s22   ;;  %s1749_s21 = sphi %s1842_s21, %s2223_s21  }
   0xf   : > { %s344_s26 = sshll.u32 %s1763_s25, 4  ;;  %s1863_s27 = sadd.s32 4294967295, %s1761_s24   ;;  %s345_s26 = int_to_ptr.vmem [resolvable:$true] %s344_s26 }
  0x10   : > { %p1209_p0 = scmp.ge.s32.totalorder %s1761_s24, 1  ;;  %p2186_p1 = scmp.eq.s32.totalorder %s1863_s27, 0 }
  0x11   : > { %p332_p2 = scmp.lt.s32.totalorder %s1761_s24, 3  ;;  %s1764_s29 = smov [#allocation8]  }
  0x12   : > { %s382_s30 = sshll.u32 %s1764_s29, 4  ;;  %s1765_s14 = smov [#allocation7]   ;;  %s1881_s30 = int_to_ptr.vmem [resolvable:$true] %s382_s30 }
  0x13   : > { %p1868_p3 = pnand %p1209_p0, %p332_p2  ;;  %s1883_s15 = sshll.u32 %s1765_s14, 4  ;;  %s367_s15 = int_to_ptr.vmem [resolvable:$true] %s1883_s15 }
  0x14   : > { %s1538_s16 = scalar_lea.vmem %s345_s26, 1024  ;;  %p1546_p11 = scmp.lt.s32.totalorder %s345_s26, %s345_s26 }
  0x15   : > { %s2198_s28 = scalar_select %p1868_p3, 1, 0 }
  0x16   : > { %p1424_p5 = pneg %p1868_p3  ;;  %p1539_p8 = scmp.ne.s32.totalorder %s345_s26, %s1538_s16 }
  0x17   : > { %p1547_p12 = scmp.lt.s32.totalorder %s1538_s16, %s1538_s16 }
  0x18   : > { %p1877_p6 = pnand %p1424_p5, %p2186_p1 }
  0x19   : > { %p1548_p13 = por %p1547_p12, %p1546_p11 }
  0x1a   : > { %p1529_p7 = pneg %p1877_p6 }
  0x1c   : > { %p1541_p9 = pnand %p1539_p8, %p1529_p7 }
  0x1e   : > { %p1542_p10 = pneg %p1541_p9 }
  0x20   : > { %p1549_p0 = pnand %p1548_p13, %p1542_p10 }
  0x22   : > { %1552 = shalt.err (!%p1549_p0)
}
  0x23   : > { %s1766_s17 = smov 64   ;;  %s1767_s18 = smov 4  }
  0x24   : > { %s2200_s1 = sld [smem:[#allocation22_spill]]  ;;  %s1564_s25 = scalar_lea.vmem %s1881_s30, 2048 }
  0x25   : > { %p1565_p2 = scmp.ne.s32.totalorder %s1881_s30, %s1564_s25  ;;  %p1572_p9 = scmp.lt.s32.totalorder %s1881_s30, %s1881_s30 }
  0x26   : > { %p1573_p10 = scmp.lt.s32.totalorder %s1564_s25, %s1564_s25 }
  0x27   : > { %p1567_p5 = pnand %p1565_p2, %p1529_p7 }
  0x28   : > { %p1574_p11 = por %p1573_p10, %p1572_p9 }
  0x29   : > { %p1568_p8 = pneg %p1567_p5 }
  0x2a   : > { %1427 = dma.hbm_to_vmem [thread:$0]  (!%p1877_p6), %s2200_s1, 1024, %s345_s26, [#allocation6], %s1766_s17, %s1766_s17, %s1767_s18  }
  0x2b   : > { %p1575_p12 = pnand %p1574_p11, %p1568_p8 }
  0x2d   : > { %1578 = shalt.err (!%p1575_p12)
}
  0x2e   : > { %s1768_s29 = smov 128   ;;  %s1769_s14 = smov 8  }
  0x2f   : > { %s2201_s7 = sld [smem:[#allocation24_spill]]  ;;  %s1590_s19 = scalar_lea.vmem %s367_s15, 1024 }
  0x30   : > { %p1591_p13 = scmp.ne.s32.totalorder %s367_s15, %s1590_s19  ;;  %p1598_p5 = scmp.lt.s32.totalorder %s367_s15, %s367_s15 }
  0x31   : > { %p1599_p8 = scmp.lt.s32.totalorder %s1590_s19, %s1590_s19 }
  0x32   : > { %p1593_p0 = pnand %p1591_p13, %p1529_p7 }
  0x33   : > { %p1600_p9 = por %p1599_p8, %p1598_p5 }
  0x34   : > { %p1594_p2 = pneg %p1593_p0 }
  0x35   : > { %1433 = dma.hbm_to_vmem [thread:$0]  (!%p1877_p6), %s2201_s7, 2048, %s1881_s30, [#allocation9], %s1768_s29, %s1768_s29, %s1769_s14  }
  0x36   : > { %p1601_p10 = pnand %p1600_p9, %p1594_p2 }
  0x38   : > { %1604 = shalt.err (!%p1601_p10)
}
  0x39   : > { %s2202_s5 = sld [smem:[#allocation23_spill]]  ;;  %s1770_s30 = smov [#allocation10]  }
  0x3a   : > { %s395_s29 = sshll.u32 %s1770_s30, 4  ;;  %s396_s29 = int_to_ptr.vmem [resolvable:$true] %s395_s29 }
  0x3b   : > { %s1616_s14 = scalar_lea.vmem %s396_s29, 1024  ;;  %p1624_p0 = scmp.lt.s32.totalorder %s396_s29, %s396_s29 }
  0x3c   : > { %p1617_p11 = scmp.ne.s32.totalorder %s396_s29, %s1616_s14  ;;  %p1625_p2 = scmp.lt.s32.totalorder %s1616_s14, %s1616_s14 }
  0x3e   : > { %p1619_p12 = pnand %p1617_p11, %p1529_p7  ;;  %p1626_p5 = por %p1625_p2, %p1624_p0 }
  0x3f   : > { %1430 = dma.hbm_to_vmem [thread:$0]  (!%p1877_p6), %s2202_s5, 1024, %s367_s15, [#allocation6], %s1766_s17, %s1766_s17, %s1767_s18  }
  0x40   : > { %p1620_p13 = pneg %p1619_p12 }
  0x42   : > { %p1627_p8 = pnand %p1626_p5, %p1620_p13 }
  0x44   : > { %1630 = shalt.err (!%p1627_p8)
}
  0x45   : > { %s2203_s8 = sld [smem:[#allocation25_spill]]  ;;  %s1208_s13 = sadd.s32 4294967294, %s1761_s24  }
  0x46   : > { %s1936_s16 = sadd.s32 1, %s1761_s24   ;;  %s41_s20 = sadd.s32 1, %s1757_s23 }
  0x47   : > { %2204 = sst [smem:[#allocation20_spill]] %s1936_s16  ;;  %s38_s19 = ssub.s32 %s1761_s24, %s1936_s16 }
  0x48   : > { %p39_p7 = scmp.eq.s32.totalorder %s38_s19, 0  ;;  %p48_p9 = scmp.ne.s32.totalorder %s1757_s23, %s1753_s22 }
  0x49   : > { %p49_p10 = scmp.eq.s32.totalorder %s1761_s24, 0  ;;  %p54_p11 = scmp.ne.s32.totalorder %s1753_s22, %s1749_s21 }
  0x4a   : > { %s1947_s25 = scalar_select %p39_p7, %s1757_s23, %s41_s20  }
  0x4b   : > { %1436 = dma.hbm_to_vmem [thread:$0]  (!%p1877_p6), %s2203_s8, 1024, %s396_s29, [#allocation9], %s1766_s17, %s1766_s17, %s1767_s18  }
  0x4c   : > { %2205 = sst [smem:[#allocation21_spill]] %s1947_s25  ;;  %p1949_p12 = por %p49_p10, %p48_p9 }
  0x4d   : > { %p1955_p6 = por %p2186_p1, %p54_p11  ;;  %p267_p13 = scmp.eq.s32.totalorder %s1863_s27, 1 }
  0x4e   : > { %p273_p0 = scmp.eq.s32.totalorder %s1208_s13, 1  ;;  %p1452_p2 = scmp.lt.s32.totalorder %s1761_s24, 2 }
  0x4f   : > { %s2207_s17 = scalar_select %p1955_p6, 1, 0 }
  0x50   : > { %s412_s18 = sand.u32 1, %s1757_s23   ;;  %p1962_p5 = por %p267_p13, %p48_p9 }
  0x51   : > { %p1966_p8 = por %p273_p0, %p54_p11  ;;  %s1215_s15 = sshll.u32 %s412_s18, 2 }
  0x52   : > { %s2208_s29 = scalar_select %p1962_p5, 1, 0 }
  0x53   : > { %s2209_s14 = scalar_select %p1966_p8, 1, 0 }
  0x54   : > { %s1216_s26 = sshll.u32 %s1761_s24, 6  ;;  %s416_s13 = scalar_lea.vmem [#allocation2], %s1215_s15 }
  0x55   : > { %s1974_s1 = scalar_lea.hbm %s2173_s0, %s1216_s26  ;;  %s423_s5 = sshll.u32 %s416_s13, 4  ;;  %s424_s5 = int_to_ptr.vmem [resolvable:$true] %s423_s5 }
  0x56   : > { %p1978_p7 = pnand %p1452_p2, %p1949_p12  ;;  %s413_s8 = scalar_lea.sflag [#allocation3], %s412_s18 }
  0x57   : > { %s1631_s25 = scalar_lea.hbm %s1974_s1, 64  ;;  %s1636_s20 = scalar_lea.hbm %s2173_s0, 128 }
  0x58   : > { %p1632_p9 = scmp.ne.s32.totalorder %s1974_s1, %s1631_s25  ;;  %p1633_p10 = pneg %p1978_p7 }
  0x59   : > { %p1637_p0 = scmp.lt.s32.totalorder %s1974_s1, %s2173_s0  ;;  %p1638_p12 = scmp.lt.s32.totalorder %s1636_s20, %s1631_s25 }
  0x5a   : > { %p1634_p11 = pnand %p1633_p10, %p1632_p9 }
  0x5b   : > { %p1639_p2 = por %p1638_p12, %p1637_p0 }
  0x5c   : > { %p1635_p13 = pneg %p1634_p11 }
  0x5e   : > { %p1640_p4 = pnand %p1639_p2, %p1635_p13 }
  0x60   : > { %1643 = shalt.err (!%p1640_p4)
}
  0x61   : > { %s1644_s30 = scalar_lea.vmem %s424_s5, 64  ;;  %s1771_s18 = smov [#allocation2]  }
  0x62   : > { %p1645_p1 = scmp.ne.s32.totalorder %s424_s5, %s1644_s30  ;;  %s1649_s23 = sshll.u32 %s1771_s18, 4  ;;  %s1650_s23 = int_to_ptr.vmem [resolvable:$false] %s1649_s23 }
  0x63   : > { %s1651_s16 = scalar_lea.vmem %s1650_s23, 128  ;;  %p1652_p9 = scmp.lt.s32.totalorder %s424_s5, %s1650_s23 }
  0x64   : > { %p1647_p8 = pnand %p1645_p1, %p1633_p10  ;;  %p1653_p11 = scmp.lt.s32.totalorder %s1651_s16, %s1644_s30 }
  0x66   : > { %p1648_p5 = pneg %p1647_p8  ;;  %p1654_p6 = por %p1653_p11, %p1652_p9 }
  0x68   : > { %p1655_p3 = pnand %p1654_p6, %p1648_p5 }
  0x6a   : > { %1658 = shalt.err (!%p1655_p3)
}
  0x6b   : > { %1440 = dma.hbm_to_vmem [thread:$0]  (!%p1978_p7), %s1974_s1, 64, %s424_s5, %s413_s8  }
  0x6c   : > { %p2211_p13 = scmp.ne.s32.totalorder %s2198_s28, 0 }
  0x6d   : > { %s1999_s25 = sand.u32 (!%p2211_p13), 1, %s1753_s22   ;;  %p2212_p1 = scmp.ne.s32.totalorder (!%p2211_p13), %s2207_s17, 0 }
  0x6e   : > { %432 = sbr.rel (%p2211_p13) target bundleno = 1579 (0x62b), region = 60  ;;  %s1218_s26 = sshll.u32 (!%p2211_p13), %s1999_s25, 2 }
  0x6f   : > { %s435_s19 = scalar_lea.sflag (!%p2211_p13), [#allocation3], %s1999_s25  ;;  %s2003_s23 = scalar_lea.vmem (!%p2211_p13), [#allocation2], %s1218_s26 }
  0x73   : > { %1728 = dma.done.wait (%p2212_p1), %s435_s19, 64  }
  0x74   : > { %1730 = vsyncadd (%p2212_p1), %s435_s19, 4294967232  ;;  %p2213_p3 = scmp.eq.s32.totalorder %s1863_s27, 0 }
  0x76   : > { %1732 = dma.done.wait (%p2213_p3), [#allocation6], 2048   ;;  %p2214_p4 = pmov %p2213_p3 }
  0x77   : > { %p2215_p6 = pmov %p2213_p3 }
  0x78   : > { %1734 = vsyncadd (%p2214_p4), [#allocation6], 4294965248 }
  0x79   : > { %1736 = dma.done.wait (%p2215_p6), [#allocation9], 3072   ;;  %p2216_p5 = pmov %p2213_p3 }
  0x7a   : > { %v1772_v0 = vmov 0.0   ;;  %vm1773_vm0 = vmmov 0   ;;  %v1501_v1 = vld [vmem:[#allocation5 + $0x38] sm:$0xff]   ;;  %v1502_v2 = vld [vmem:[#allocation5 + $0x30] sm:$0xff]   ;;  %v1503_v3 = vld [vmem:[#allocation5 + $0x28] sm:$0xff]   ;;  %p503_p8 = scmp.lt.s32.totalorder %s1863_s27, 1 }
  0x7b   : > { %1738 = vsyncadd (%p2216_p5), [#allocation9], 4294964224  ;;  %1307 = vmatprep.subr.bf16.mxu0 %v1772_v0  ;;  %1323 = vmatprep.mubr.msk.bf16.mxu0 %vm1773_vm0, %v1772_v0  ;;  %v1504_v4 = vld [vmem:[#allocation5 + $0x20] sm:$0xff]   ;;  %v1505_v5 = vld [vmem:[#allocation5 + $0x18] sm:$0xff]   ;;  %vm990_vm3 = vcmask 7168   ;;  %s1256_s1 = sshll.u32 %s1863_s27, 3 }
  0x7c   : > { %1327 = vmatprep.subr.bf16.mxu1 %v1772_v0  ;;  %1343 = vmatprep.mubr.msk.bf16.mxu1 %vm1773_vm0, %v1772_v0  ;;  %v1506_v6 = vld [vmem:[#allocation5 + $0x10] sm:$0xff]   ;;  %v1507_v7 = vld [vmem:[#allocation5 + $0x8] sm:$0xff]   ;;  %v1508_v8 = vld [vmem:[#allocation5] sm:$0xff]   ;;  %s504_s30 = scalar_select %p503_p8, %s1863_s27, 1 }
  0x7d   : > { %1308 = vmatpush3.bf16.msra.mxu0 %v1501_v1  ;;  %v508_v9 = vld [vmem:[%s2003_s23] sm:$0xf]  ;;  %v1510_v19 = vld [vmem:[#allocation7 + $0x30] sm:$0xff]   ;;  %v1511_v20 = vld [vmem:[#allocation7 + $0x28] sm:$0xff]   ;;  %s1223_s5 = sshll.u32 %s1999_s25, 3  ;;  %s1259_s28 = sshll.u32 %s1863_s27, 7 }
  0x7e   : > { %1309 = vmatprep.subr.bf16.mxu0 %v1772_v0  ;;  %v1225_v10 = vld [vmem:[%s2175_s2] ss:$0 sm:$0xff]  ;;  %v1512_v21 = vld [vmem:[#allocation7 + $0x20] sm:$0xff]   ;;  %v1514_v23 = vld [vmem:[#allocation7 + $0x10] sm:$0xff]   ;;  %s1224_s18 = sshll.u32 %s504_s30, 3  ;;  %s490_s7 = scalar_lea.vmem [#allocation11], %s1223_s5 }
  0x7f   : > { %v1509_v18 = vld [vmem:[#allocation7 + $0x38] sm:$0xff]   ;;  %v1515_v24 = vld [vmem:[#allocation7 + $0x8] sm:$0xff]   ;;  %v1516_v25 = vld [vmem:[#allocation7] sm:$0xff]   ;;  %s506_s23 = scalar_lea.vmem %s2184_s11, %s1224_s18  ;;  %s1032_s8 = sshll.u32 %s490_s7, 4  ;;  %s2107_s8 = int_to_ptr.vmem [resolvable:$true] %s1032_s8 }
  0x80   : > { %1328 = vmatpush3.bf16.msra.mxu1 %v1509_v18  ;;  %v1513_v22 = vld [vmem:[#allocation7 + $0x18] sm:$0xff]   ;;  %v1518_v27 = vld [vmem:[#allocation10 + $0x30] sm:$0xff]   ;;  %v1519_v28 = vld [vmem:[#allocation10 + $0x28] sm:$0xff]   ;;  %s2112_s20 = scalar_lea.hbm %s2183_s10, %s1259_s28  ;;  %s1011_s15 = scalar_lea.sflag [#allocation4], %s1999_s25 }
  0x81   : > { %1310 = vmatpush3.bf16.msra.mxu0 %v1502_v2  ;;  %1329 = vmatprep.subr.bf16.mxu1 %v1772_v0  ;;  %v1517_v26 = vld [vmem:[#allocation10 + $0x38] sm:$0xff]   ;;  %v1520_v29 = vld [vmem:[#allocation10 + $0x20] sm:$0xff]   ;;  %v1522_v31 = vld [vmem:[#allocation10 + $0x10] sm:$0xff]   ;;  %s1659_s13 = scalar_lea.vmem %s2107_s8, 128  ;;  %p2217_p10 = scmp.ne.s32.totalorder %s2208_s29, 0 }
  0x82   : > { %1311 = vmatprep.subr.bf16.mxu0 %v1772_v0  ;;  %v1521_v30 = vld [vmem:[#allocation10 + $0x18] sm:$0xff]   ;;  %v1523_v32 = vld [vmem:[#allocation10 + $0x8] sm:$0xff]   ;;  %v1524_v48 = vld [vmem:[#allocation10] sm:$0xff]   ;;  %p1660_p7 = scmp.ne.s32.totalorder %s2107_s8, %s1659_s13  ;;  %s1775_s30 = smov [#allocation11]  }
  0x83   : > { %v1234_v42 = vld [vmem:[%s2176_s3] ss:$0 sm:$0xff]  ;;  %v909_v18 = vld [vmem:[#allocation8 + $0x30] sm:$0xff]  ;;  %s1663_s18 = sshll.u32 %s1775_s30, 4  ;;  %s1664_s18 = int_to_ptr.vmem [resolvable:$false] %s1663_s18 }
  0x84   : > { %1330 = vmatpush3.bf16.msra.mxu1 %v1510_v19  ;;  %v1235_v44 = vld [vmem:[%s2177_s4] ss:$0 sm:$0xff]  ;;  %v908_v19 = vld [vmem:[#allocation8 + $0x28] sm:$0xff]  ;;  %p1661_p0 = pnand %p1660_p7, %p2217_p10  ;;  %s1665_s26 = scalar_lea.vmem %s1664_s18, 256 }
  0x85   : > { %1312 = vmatpush3.bf16.msra.mxu0 %v1503_v3  ;;  %1331 = vmatprep.subr.bf16.mxu1 %v1772_v0  ;;  %v1236_v49 = vld [vmem:[%s2179_s6] ss:$0 sm:$0xff]  ;;  %v880_v3 = vlaneseq  ;;  %p1666_p2 = scmp.lt.s32.totalorder %s2107_s8, %s1664_s18  ;;  %p1667_p9 = scmp.lt.s32.totalorder %s1665_s26, %s1659_s13 }
  0x86   : > { %1313 = vmatprep.subr.bf16.mxu0 %v1772_v0  ;;  %v1253_v57 = vld [vmem:[%s2182_s9] ss:$0 sm:$0xff]  ;;  %p1662_p12 = pneg %p1661_p0 }
  0x87   : > { %p1668_p11 = por %p1667_p9, %p1666_p2 }
  0x88   : > { %1332 = vmatpush3.bf16.msra.mxu1 %v1511_v20  ;;  %v907_v20 = vld [vmem:[#allocation8 + $0x20] sm:$0xff] }
  0x89   : > { %1314 = vmatpush3.bf16.msra.mxu0 %v1504_v4  ;;  %1333 = vmatprep.subr.bf16.mxu1 %v1772_v0  ;;  %v2079_v4 = vand.u32 127, %v880_v3  ;;  %p1669_p13 = pnand %p1668_p11, %p1662_p12 }
  0x8a   : > { %1315 = vmatprep.subr.bf16.mxu0 %v1772_v0 }
  0x8c   : > { %1334 = vmatpush3.bf16.msra.mxu1 %v1512_v21  ;;  %v906_v21 = vld [vmem:[#allocation8 + $0x18] sm:$0xff] }
  0x8d   : > { %1316 = vmatpush3.bf16.msra.mxu0 %v1505_v5  ;;  %1335 = vmatprep.subr.bf16.mxu1 %v1772_v0 }
  0x8e   : > { %1317 = vmatprep.subr.bf16.mxu0 %v1772_v0 }
  0x90   : > { %1336 = vmatpush3.bf16.msra.mxu1 %v1513_v22 }
  0x91   : > { %1318 = vmatpush3.bf16.msra.mxu0 %v1506_v6  ;;  %1337 = vmatprep.subr.bf16.mxu1 %v1772_v0 }
  0x92   : > { %1319 = vmatprep.subr.bf16.mxu0 %v1772_v0 }
  0x94   : > { %1338 = vmatpush3.bf16.msra.mxu1 %v1514_v23 }
  0x95   : > { %1320 = vmatpush3.bf16.msra.mxu0 %v1507_v7  ;;  %1339 = vmatprep.subr.bf16.mxu1 %v1772_v0 }
  0x96   : > { %1321 = vmatprep.subr.bf16.mxu0 %v1772_v0 }
  0x98   : > { %1340 = vmatpush3.bf16.msra.mxu1 %v1515_v24 }
  0x99   : > { %1322 = vmatpush3.bf16.msra.mxu0 %v1508_v8  ;;  %1341 = vmatprep.subr.bf16.mxu1 %v1772_v0 }
  0x9a   : > { %1347 = vmatprep.subr.bf16.mxu0 %v1772_v0 }
  0x9c   : > { %1324 = vmatmul.mubr.bf16.vlgmr.msra.gmra.mxu0 %v508_v9  ;;  %1342 = vmatpush3.bf16.msra.mxu1 %v1516_v25  ;;  %v918_v9 = vld [vmem:[#allocation8 + $0x78] sm:$0xff] }
  0x9d   : > { %1363 = vmatprep.mubr.msk.bf16.mxu0 %vm1773_vm0, %v1772_v0  ;;  %1367 = vmatprep.subr.mxu1 %v1772_v0 }
  0x9e   : > { %1348 = vmatpush3.bf16.msra.mxu0 %v1517_v26  ;;  %v905_v26 = vld [vmem:[#allocation8 + $0x10] sm:$0xff] }
  0x9f   : > { %1349 = vmatprep.subr.bf16.mxu0 %v1772_v0 }
  0xa2   : > { %1350 = vmatpush3.bf16.msra.mxu0 %v1518_v27  ;;  %v904_v27 = vld [vmem:[#allocation8 + $0x8] sm:$0xff] }
  0xa3   : > { %1351 = vmatprep.subr.bf16.mxu0 %v1772_v0 }
  0xa6   : > { %1352 = vmatpush3.bf16.msra.mxu0 %v1519_v28  ;;  %v903_v28 = vld [vmem:[#allocation8] sm:$0xff] }
  0xa7   : > { %1353 = vmatprep.subr.bf16.mxu0 %v1772_v0 }
  0xaa   : > { %1354 = vmatpush3.bf16.msra.mxu0 %v1520_v29 }
  0xab   : > { %1355 = vmatprep.subr.bf16.mxu0 %v1772_v0 }
  0xae   : > { %1356 = vmatpush3.bf16.msra.mxu0 %v1521_v30 }
  0xaf   : > { %1357 = vmatprep.subr.bf16.mxu0 %v1772_v0 }
  0xb2   : > { %1358 = vmatpush3.bf16.msra.mxu0 %v1522_v31 }
  0xb3   : > { %1359 = vmatprep.subr.bf16.mxu0 %v1772_v0 }
  0xb6   : > { %1360 = vmatpush3.bf16.msra.mxu0 %v1523_v32 }
  0xb7   : > { %1361 = vmatprep.subr.bf16.mxu0 %v1772_v0 }
  0xba   : > { %1362 = vmatpush3.bf16.msra.mxu0 %v1524_v48 }
 0x15c   : > { %v614_v11 = vpop.f32.mrf.mxu0 }
 0x15d   : > { %v615_v12 = vadd.f32 %v1225_v10, %v614_v11  ;;  %v917_v10 = vld [vmem:[#allocation8 + $0x70] sm:$0xff]  ;;  %v916_v11 = vld [vmem:[#allocation8 + $0x68] sm:$0xff] }
 0x15e   : > { %v1325_v13 = vpop.f32.mrf.mxu0 }
 0x15f   : > { %v2037_v14 = vmax.f32 %v615_v12, 0.0  ;;  %v915_v12 = vld [vmem:[#allocation8 + $0x60] sm:$0xff]  ;;  %v914_v13 = vld [vmem:[#allocation8 + $0x58] sm:$0xff] }
 0x160   : > { %v617_v15 = vpop.f32.mrf.mxu0 }
 0x161   : > { %621 = vadd.xlane.f32.xlu0 %v2037_v14  ;;  %v624_v17 = vmul.f32 %v2037_v14, %v2037_v14  ;;  %v912_v15 = vld [vmem:[#allocation8 + $0x48] sm:$0xff] }
 0x162   : > { %v1326_v16 = vpop.f32.mrf.mxu0 }
 0x163   : > { %v911_v16 = vld [vmem:[#allocation8 + $0x40] sm:$0xff] }
 0x165   : > { %625 = vadd.xlane.f32.xlu0 %v624_v17  ;;  %v910_v17 = vld [vmem:[#allocation8 + $0x38] sm:$0xff] }
 0x1ea   : > { %v622_v33 = vpop.xlane.xlu0 %621 }
 0x1eb   : > { %v623_v34 = vmul.f32 0.03125, %v622_v33 }
 0x1ed   : > { %v628_v36 = vmul.f32 %v623_v34, %v623_v34  ;;  %v630_v40 = vsub.f32 %v2037_v14, %v623_v34  ;;  %v913_v14 = vld [vmem:[#allocation8 + $0x50] sm:$0xff]  ;;  %v1774_v34 = vmov 1.0  }
 0x1ee   : > { %v626_v35 = vpop.xlane.xlu0 %625 }
 0x1ef   : > { %v627_v37 = vmul.f32 0.03125, %v626_v35  ;;  %v993_v35 = vshrl.u32 %v880_v3, 7 }
 0x1f1   : > { %v629_v38 = vsub.f32 %v627_v37, %v628_v36  ;;  %v995_v36 = vstv %s1256_s1 }
 0x1f2   : > { %v996_v37 = vadd.s32 %v995_v36, %v993_v35 }
 0x1f3   : > { %v631_v39 = vadd.f32 1e-05, %v629_v38 }
 0x1f4   : > { %vm998_vm5 = vcmp.lt.s32.totalorder %v996_v37, 16 }
 0x1f5   : > { %1525 = vrsqrt.f32 %v631_v39  ;;  %v1257_v39 = vsel %vm998_vm5, 1.0, %v1772_v0 }
 0x202   : > { %v1526_v41 = vpop.eup %1525 }
 0x203   : > { %v633_v43 = vmul.f32 %v1526_v41, %v630_v40 }
 0x205   : > { %v641_v45 = vmul.f32 %v1234_v42, %v633_v43 }
 0x207   : > { %v649_v46 = vadd.f32 %v1235_v44, %v641_v45 }
 0x209   : > { %v650_v47 = vpack.c.bf16 %v649_v46, %v649_v46 }
 0x20b   : > { %1344 = vmatmul.mubr.bf16.vlgmr.msra.gmra.mxu1 %v650_v47 }
 0x20c   : > { %1399 = vmatprep.mubr.msk.f32.mxu1 %vm1773_vm0, %v1772_v0  ;;  %1368 = vmatpush3.msra.mxu1 %v918_v9 }
 0x20d   : > { %1369 = vmatprep.subr.mxu1 %v1772_v0 }
 0x20e   : > { %1370 = vmatpush3.msra.mxu1 %v917_v10 }
 0x20f   : > { %1371 = vmatprep.subr.mxu1 %v1772_v0 }
 0x210   : > { %1372 = vmatpush3.msra.mxu1 %v916_v11 }
 0x211   : > { %1373 = vmatprep.subr.mxu1 %v1772_v0 }
 0x212   : > { %1374 = vmatpush3.msra.mxu1 %v915_v12 }
 0x213   : > { %1375 = vmatprep.subr.mxu1 %v1772_v0 }
 0x214   : > { %1376 = vmatpush3.msra.mxu1 %v914_v13 }
 0x215   : > { %1377 = vmatprep.subr.mxu1 %v1772_v0 }
 0x216   : > { %1378 = vmatpush3.msra.mxu1 %v913_v14 }
 0x217   : > { %1379 = vmatprep.subr.mxu1 %v1772_v0 }
 0x218   : > { %1380 = vmatpush3.msra.mxu1 %v912_v15 }
 0x219   : > { %1381 = vmatprep.subr.mxu1 %v1772_v0 }
 0x21a   : > { %1382 = vmatpush3.msra.mxu1 %v911_v16 }
 0x21b   : > { %1383 = vmatprep.subr.mxu1 %v1772_v0 }
 0x21c   : > { %1384 = vmatpush3.msra.mxu1 %v910_v17 }
 0x21d   : > { %1385 = vmatprep.subr.mxu1 %v1772_v0 }
 0x21e   : > { %1386 = vmatpush3.msra.mxu1 %v909_v18 }
 0x21f   : > { %1387 = vmatprep.subr.mxu1 %v1772_v0 }
 0x220   : > { %1388 = vmatpush3.msra.mxu1 %v908_v19 }
 0x221   : > { %1389 = vmatprep.subr.mxu1 %v1772_v0 }
 0x222   : > { %1390 = vmatpush3.msra.mxu1 %v907_v20 }
 0x223   : > { %1391 = vmatprep.subr.mxu1 %v1772_v0 }
 0x224   : > { %1392 = vmatpush3.msra.mxu1 %v906_v21 }
 0x225   : > { %1393 = vmatprep.subr.mxu1 %v1772_v0 }
 0x226   : > { %1394 = vmatpush3.msra.mxu1 %v905_v26 }
 0x227   : > { %1395 = vmatprep.subr.mxu1 %v1772_v0 }
 0x228   : > { %1396 = vmatpush3.msra.mxu1 %v904_v27 }
 0x229   : > { %1397 = vmatprep.subr.mxu1 %v1772_v0 }
 0x22a   : > { %1398 = vmatpush3.msra.mxu1 %v903_v28 }
 0x2cb   : > { %v756_v50 = vpop.f32.mrf.mxu1 }
 0x2cc   : > { %v2069_v51 = vadd.f32 %v1236_v49, %v756_v50 }
 0x2cd   : > { %v1345_v52 = vpop.f32.mrf.mxu1 }
 0x2ce   : > { %v765_v53 = vpack.c.bf16 %v2069_v51, %v2069_v51  ;;  %v762_v54 = vmul.f32 %v2069_v51, %v2069_v51 }
 0x2cf   : > { %v759_v55 = vpop.f32.mrf.mxu1 }
 0x2d0   : > { %1364 = vmatmul.mubr.bf16.vlgmr.msra.gmra.mxu0 %v765_v53  ;;  %763 = vadd.xlane.f32.xlu1 %v762_v54 }
 0x2d1   : > { %v1346_v56 = vpop.f32.mrf.mxu1 }
 0x359   : > { %v764_v58 = vpop.xlane.xlu1 %763 }
 0x35a   : > { %v877_v60 = vadd.f32 %v1253_v57, %v764_v58 }
 0x390   : > { %v864_v59 = vpop.f32.mrf.mxu0 }
 0x391   : > { %v878_v61 = vmul.f32 2.0, %v864_v59 }
 0x392   : > { %v1365_v62 = vpop.f32.mrf.mxu0 }
 0x393   : > { %v879_v63 = vsub.f32 %v877_v60, %v878_v61 }
 0x394   : > { %v867_v1 = vpop.f32.mrf.mxu0 }
 0x395   : > { %882 = vmin.xlane.f32.xlu1 %v879_v63 }
 0x396   : > { %v1366_v2 = vpop.f32.mrf.mxu0 }
 0x41e   : > { %v883_v5 = vpop.xlane.xlu1 %882 }
 0x41f   : > { %vm884_vm1 = vcmp.eq.f32.partialorder %v879_v63, %v883_v5 }
 0x420   : > { %v885_v6 = vsel %vm884_vm1, %v2079_v4, 128 }
 0x421   : > { %v887_v7 = vshra.s32 %v885_v6, 16  ;;  %v886_v22 = vand.u32 65535, %v885_v6 }
 0x423   : > { %v889_v8 = vcvt.s32.f32 %v887_v7  ;;  %v888_v24 = vcvt.s32.f32 %v886_v22 }
 0x425   : > { %890 = vmin.xlane.f32.xlu0 %v889_v8 }
 0x4ae   : > { %v891_v23 = vpop.xlane.xlu0 %890 }
 0x4af   : > { %vm892_vm2 = vcmp.eq.f32.partialorder %v889_v8, %v891_v23  ;;  %v897_v29 = vcvt.f32.s32 %v891_v23 }
 0x4b0   : > { %v893_v25 = vsel %vm892_vm2, %v888_v24, inf }
 0x4b1   : > { %894 = vmin.xlane.f32.xlu1 %v893_v25  ;;  %v898_v31 = vshll.u32 %v897_v29, 16 }
 0x53a   : > { %v895_v30 = vpop.xlane.xlu1 %894 }
 0x53b   : > { %v896_v32 = vcvt.f32.s32 %v895_v30 }
 0x53d   : > { %v899_v33 = vadd.s32 %v898_v31, %v896_v32 }
 0x53f   : > { %vm900_vm4 = vcmp.eq.s32.totalorder %v2079_v4, %v899_v33  ;;  %991 = vst.msk [vmem:[%s506_s23] sm:$0xff] %vm990_vm3, %v899_v33 }
 0x540   : > { %1400 = vmatmul.mubr.msk.f32.vlgmr.msra.gmra.mxu1 %vm900_vm4, %v1774_v34 }
 0x600   : > { %v985_v38 = vpop.f32.mrf.mxu1 }
 0x601   : > { %989 = vst [vmem:[%s490_s7] sm:$0xff] %v985_v38  ;;  %v997_v40 = vsub.f32 %v985_v38, %v2069_v51 }
 0x602   : > { %v1401_v41 = vpop.f32.mrf.mxu1 }
 0x603   : > { %1672 = shalt.err (!%p1669_p13)
}
 0x604   : > { %s1673_s19 = scalar_lea.hbm %s2112_s20, 128  ;;  %s1677_s5 = scalar_lea.hbm %s2183_s10, 256 }
 0x605   : > { %p1674_p1 = scmp.ne.s32.totalorder %s2112_s20, %s1673_s19  ;;  %p1678_p6 = scmp.lt.s32.totalorder %s2112_s20, %s2183_s10 }
 0x606   : > { %p1679_p5 = scmp.lt.s32.totalorder %s1677_s5, %s1673_s19 }
 0x607   : > { %p1675_p3 = pnand %p1674_p1, %p2217_p10 }
 0x608   : > { %p1680_p8 = por %p1679_p5, %p1678_p6 }
 0x609   : > { %p1676_p4 = pneg %p1675_p3 }
 0x60b   : > { %p1681_p7 = pnand %p1680_p8, %p1676_p4 }
 0x60d   : > { %1684 = shalt.err (!%p1681_p7)
}
 0x60e   : > { %1420 = dma.vmem_to_hbm [thread:$0]  (%p2217_p10), %s2107_s8, 128, %s2112_s20, %s1011_s15   ;;  %v1001_v0 = vmul.f32 %v1257_v39, %v997_v40 }
 0x60f   : > { %s1260_s16 = sshll.u32 %s1863_s27, 4  ;;  %s502_s17 = scalar_lea.vmem [#allocation12], %s1999_s25 }
 0x610   : > { %v1002_v42 = vmul.f32 %v1001_v0, %v1001_v0  ;;  %s1048_s13 = sshll.u32 %s502_s17, 4  ;;  %s1046_s26 = scalar_lea.hbm %s2185_s12, %s1260_s16  ;;  %s1049_s13 = int_to_ptr.vmem [resolvable:$true] %s1048_s13 }
 0x611   : > { %s1020_s19 = scalar_lea.sflag [#allocation13], %s1999_s25  ;;  %s1685_s8 = scalar_lea.vmem %s1049_s13, 16 }
 0x612   : > { %v1003_v43 = vrot.slane %v1002_v42, 4  ;;  %p1686_p0 = scmp.ne.s32.totalorder %s1049_s13, %s1685_s8  ;;  %s1776_s20 = smov [#allocation12]  }
 0x613   : > { %s1689_s15 = sshll.u32 %s1776_s20, 4  ;;  %s1690_s15 = int_to_ptr.vmem [resolvable:$false] %s1689_s15 }
 0x614   : > { %v1004_v44 = vadd.f32 %v1003_v43, %v1002_v42  ;;  %p1687_p12 = pnand %p1686_p0, %p2217_p10  ;;  %s1691_s27 = scalar_lea.vmem %s1690_s15, 32 }
 0x615   : > { %p1692_p9 = scmp.lt.s32.totalorder %s1049_s13, %s1690_s15  ;;  %p1693_p11 = scmp.lt.s32.totalorder %s1691_s27, %s1685_s8 }
 0x616   : > { %v1005_v45 = vrot.slane %v1004_v44, 2  ;;  %p1688_p2 = pneg %p1687_p12 }
 0x617   : > { %p1694_p13 = por %p1693_p11, %p1692_p9 }
 0x618   : > { %v1006_v46 = vadd.f32 %v1005_v45, %v1004_v44 }
 0x619   : > { %p1695_p1 = pnand %p1694_p13, %p1688_p2 }
 0x61a   : > { %v1007_v47 = vrot.slane %v1006_v46, 1 }
 0x61c   : > { %v1008_v48 = vadd.f32 %v1007_v47, %v1006_v46 }
 0x61e   : > { %1009 = vst [vmem:[%s502_s17] sm:$0x1] %v1008_v48 }
 0x61f   : > { %1698 = shalt.err (!%p1695_p1)
}
 0x620   : > { %s1699_s23 = scalar_lea.hbm %s1046_s26, 16  ;;  %s1703_s5 = scalar_lea.hbm %s2185_s12, 32 }
 0x621   : > { %p1700_p3 = scmp.ne.s32.totalorder %s1046_s26, %s1699_s23  ;;  %p1704_p5 = scmp.lt.s32.totalorder %s1046_s26, %s2185_s12 }
 0x622   : > { %p1705_p8 = scmp.lt.s32.totalorder %s1703_s5, %s1699_s23 }
 0x623   : > { %p1701_p4 = pnand %p1700_p3, %p2217_p10 }
 0x624   : > { %p1706_p7 = por %p1705_p8, %p1704_p5 }
 0x625   : > { %p1702_p6 = pneg %p1701_p4 }
 0x627   : > { %p1707_p0 = pnand %p1706_p7, %p1702_p6 }
 0x629   : > { %1710 = shalt.err (!%p1707_p0)
}
 0x62a   : > { %1421 = dma.vmem_to_hbm [thread:$0]  (%p2217_p10), %s1049_s13, 16, %s1046_s26, %s1020_s19  }
 0x62b PF: > { %s1060_s16 = sand.u32 1, %s1749_s21   ;;  %p2218_p12 = scmp.ne.s32.totalorder %s2209_s14, 0 }
 0x62c   : > { %p2219_p2 = scmp.ge.s32.totalorder %s1761_s24, 2  ;;  %s1061_s17 = scalar_lea.sflag [#allocation4], %s1060_s16 }
 0x62e   : > { %p1442_p9 = pnand %p2219_p2, %p2218_p12 }
 0x630   : > { %p1443_p11 = pneg %p1442_p9 }
 0x632   : > { %1740 = dma.done.wait (%p1443_p11), %s1061_s17, 128  }
 0x633   : > { %1742 = vsyncadd (%p1443_p11), %s1061_s17, 4294967168  ;;  %s1077_s30 = scalar_lea.sflag [#allocation13], %s1060_s16 }
 0x634   : > { %1744 = dma.done.wait (%p1443_p11), %s1077_s30, 16  }
 0x635   : > { %1746 = vsyncadd (%p1443_p11), %s1077_s30, 4294967280  ;;  %s2220_s24 = sld [smem:[#allocation20_spill]]  ;;  %s2223_s21 = smov %s1753_s22 }
 0x636   : > { %s2221_s18 = sld [smem:[#allocation19_spill]] }
 0x637   : > { %s2222_s23 = sld [smem:[#allocation21_spill]] }
 0x63b   : > { %p31_p10 = scmp.ge.s32.totalorder %s2220_s24, 4  }
 0x63c   : > { %s2224_s22 = smov %s2221_s18 }
 0x63d   :  { %33 = sbr.rel (!%p31_p10) target bundleno = 14 (0xe), region = 150 }
 0x642   :  { %1081 = vsyncpa [#allocation3], 1 }
 0x643   :  { %1083 = vsyncpa [#allocation3 + $0x1], 1 }
 0x644   :  { %1084 = vsyncpa [#allocation6], 1 }
 0x645   :  { %1085 = vsyncpa [#allocation9], 1 }
 0x646   :  { %1086 = vsyncpa [#allocation4], 1 }
 0x647   :  { %1088 = vsyncpa [#allocation4 + $0x1], 1 }
 0x648   :  { %1089 = vsyncpa [#allocation13], 1 }
 0x649   :  { %1091 = vsyncpa [#allocation13 + $0x1], 1 }

// kernel: tpu_custom_call.1
= control target key start
LH: loop header
LB: loop body
LE: loop exit
PB: predicated region body
PF: predicated region fallthrough
CT: control target
= control target key end

     0   :  { %s2173_s0 = inlined_call_operand.hbm [shape: bf16[16,128], index: 0, kind: input, shape index: {}]   ;;  %s2174_s1 = inlined_call_operand.hbm [shape: bf16[128,128], index: 1, kind: input, shape index: {}]   ;;  %s2175_s2 = inlined_call_operand.vmem [shape: f32[1,128], index: 2, kind: input, shape index: {}]   ;;  %s2176_s3 = inlined_call_operand.vmem [shape: f32[1,128], index: 3, kind: input, shape index: {}]   ;;  %s2177_s4 = inlined_call_operand.vmem [shape: f32[1,128], index: 4, kind: input, shape index: {}]   ;;  %s2178_s5 = inlined_call_operand.hbm [shape: bf16[128,128], index: 5, kind: input, shape index: {}]   ;;  %s2179_s6 = inlined_call_operand.vmem [shape: f32[1,128], index: 6, kind: input, shape index: {}]   ;;  %s2180_s7 = inlined_call_operand.hbm [shape: f32[128,128], index: 7, kind: input, shape index: {}]   ;;  %s2181_s8 = inlined_call_operand.hbm [shape: bf16[128,128], index: 8, kind: input, shape index: {}]   ;;  %s2182_s9 = inlined_call_operand.vmem [shape: f32[1,128], index: 9, kind: input, shape index: {}]   ;;  %s2183_s10 = inlined_call_operand.hbm [shape: f32[16,128], index: 10, kind: output, shape index: {0}]   ;;  %s2184_s11 = inlined_call_operand.vmem [shape: s32[16,1], index: 11, kind: output, shape index: {1}]   ;;  %s2185_s12 = inlined_call_operand.hbm [shape: f32[2,1,128], index: 12, kind: output, shape index: {2}]  }
   0x1   :  { %2193 = sst [smem:[#allocation22_spill]] %s2174_s1 }
   0x2   :  { %2194 = sst [smem:[#allocation23_spill]] %s2178_s5 }
   0x3   :  { %2195 = sst [smem:[#allocation24_spill]] %s2180_s7 }
   0x4   :  { %2196 = sst [smem:[#allocation25_spill]] %s2181_s8 }
   0x5   :  { %18 = vsyncpa [#allocation3], 0 }
   0x6   :  { %20 = vsyncpa [#allocation3 + $0x1], 0 }
   0x7   :  { %21 = vsyncpa [#allocation6], 0 }
   0x8   :  { %22 = vsyncpa [#allocation9], 0 }
   0x9   :  { %23 = vsyncpa [#allocation4], 0 }
   0xa   :  { %25 = vsyncpa [#allocation4 + $0x1], 0 }
   0xb   :  { %26 = vsyncpa [#allocation13], 0 }
   0xc   :  { %28 = vsyncpa [#allocation13 + $0x1], 0  ;;  %s1842_s21 = smov 0   ;;  %s1844_s22 = smov 0  }
   0xd   :  { %s1846_s23 = smov 0   ;;  %s1848_s24 = smov 0  }
   0xe LB: > { %2197 = sst [smem:[#allocation19_spill]] %s1757_s23  ;;  %s1763_s25 = smov [#allocation5]   ;;  %s1761_s24 = sphi %s1848_s24, %s2220_s24   ;;  %s1757_s23 = sphi %s1846_s23, %s2222_s23   ;;  %s1753_s22 = sphi %s1844_s22, %s2224_s22   ;;  %s1749_s21 = sphi %s1842_s21, %s2223_s21  }
   0xf   : > { %s344_s26 = sshll.u32 %s1763_s25, 4  ;;  %s1863_s27 = sadd.s32 4294967295, %s1761_s24   ;;  %s345_s26 = int_to_ptr.vmem [resolvable:$true] %s344_s26 }
  0x10   : > { %p1209_p0 = scmp.ge.s32.totalorder %s1761_s24, 1  ;;  %p2186_p1 = scmp.eq.s32.totalorder %s1863_s27, 0 }
  0x11   : > { %p332_p2 = scmp.lt.s32.totalorder %s1761_s24, 3  ;;  %s1764_s29 = smov [#allocation8]  }
  0x12   : > { %s382_s30 = sshll.u32 %s1764_s29, 4  ;;  %s1765_s14 = smov [#allocation7]   ;;  %s1881_s30 = int_to_ptr.vmem [resolvable:$true] %s382_s30 }
  0x13   : > { %p1868_p3 = pnand %p1209_p0, %p332_p2  ;;  %s1883_s15 = sshll.u32 %s1765_s14, 4  ;;  %s367_s15 = int_to_ptr.vmem [resolvable:$true] %s1883_s15 }
  0x14   : > { %s1538_s16 = scalar_lea.vmem %s345_s26, 1024  ;;  %p1546_p11 = scmp.lt.s32.totalorder %s345_s26, %s345_s26 }
  0x15   : > { %s2198_s28 = scalar_select %p1868_p3, 1, 0 }
  0x16   : > { %p1424_p5 = pneg %p1868_p3  ;;  %p1539_p8 = scmp.ne.s32.totalorder %s345_s26, %s1538_s16 }
  0x17   : > { %p1547_p12 = scmp.lt.s32.totalorder %s1538_s16, %s1538_s16 }
  0x18   : > { %p1877_p6 = pnand %p1424_p5, %p2186_p1 }
  0x19   : > { %p1548_p13 = por %p1547_p12, %p1546_p11 }
  0x1a   : > { %p1529_p7 = pneg %p1877_p6 }
  0x1c   : > { %p1541_p9 = pnand %p1539_p8, %p1529_p7 }
  0x1e   : > { %p1542_p10 = pneg %p1541_p9 }
  0x20   : > { %p1549_p0 = pnand %p1548_p13, %p1542_p10 }
  0x22   : > { %1552 = shalt.err (!%p1549_p0)
}
  0x23   : > { %s1766_s17 = smov 64   ;;  %s1767_s18 = smov 4  }
  0x24   : > { %s2200_s1 = sld [smem:[#allocation22_spill]]  ;;  %s1564_s25 = scalar_lea.vmem %s1881_s30, 2048 }
  0x25   : > { %p1565_p2 = scmp.ne.s32.totalorder %s1881_s30, %s1564_s25  ;;  %p1572_p9 = scmp.lt.s32.totalorder %s1881_s30, %s1881_s30 }
  0x26   : > { %p1573_p10 = scmp.lt.s32.totalorder %s1564_s25, %s1564_s25 }
  0x27   : > { %p1567_p5 = pnand %p1565_p2, %p1529_p7 }
  0x28   : > { %p1574_p11 = por %p1573_p10, %p1572_p9 }
  0x29   : > { %p1568_p8 = pneg %p1567_p5 }
  0x2a   : > { %1427 = dma.hbm_to_vmem [thread:$0]  (!%p1877_p6), %s2200_s1, 1024, %s345_s26, [#allocation6], %s1766_s17, %s1766_s17, %s1767_s18  }
  0x2b   : > { %p1575_p12 = pnand %p1574_p11, %p1568_p8 }
  0x2d   : > { %1578 = shalt.err (!%p1575_p12)
}
  0x2e   : > { %s1768_s29 = smov 128   ;;  %s1769_s14 = smov 8  }
  0x2f   : > { %s2201_s7 = sld [smem:[#allocation24_spill]]  ;;  %s1590_s19 = scalar_lea.vmem %s367_s15, 1024 }
  0x30   : > { %p1591_p13 = scmp.ne.s32.totalorder %s367_s15, %s1590_s19  ;;  %p1598_p5 = scmp.lt.s32.totalorder %s367_s15, %s367_s15 }
  0x31   : > { %p1599_p8 = scmp.lt.s32.totalorder %s1590_s19, %s1590_s19 }
  0x32   : > { %p1593_p0 = pnand %p1591_p13, %p1529_p7 }
  0x33   : > { %p1600_p9 = por %p1599_p8, %p1598_p5 }
  0x34   : > { %p1594_p2 = pneg %p1593_p0 }
  0x35   : > { %1433 = dma.hbm_to_vmem [thread:$0]  (!%p1877_p6), %s2201_s7, 2048, %s1881_s30, [#allocation9], %s1768_s29, %s1768_s29, %s1769_s14  }
  0x36   : > { %p1601_p10 = pnand %p1600_p9, %p1594_p2 }
  0x38   : > { %1604 = shalt.err (!%p1601_p10)
}
  0x39   : > { %s2202_s5 = sld [smem:[#allocation23_spill]]  ;;  %s1770_s30 = smov [#allocation10]  }
  0x3a   : > { %s395_s29 = sshll.u32 %s1770_s30, 4  ;;  %s396_s29 = int_to_ptr.vmem [resolvable:$true] %s395_s29 }
  0x3b   : > { %s1616_s14 = scalar_lea.vmem %s396_s29, 1024  ;;  %p1624_p0 = scmp.lt.s32.totalorder %s396_s29, %s396_s29 }
  0x3c   : > { %p1617_p11 = scmp.ne.s32.totalorder %s396_s29, %s1616_s14  ;;  %p1625_p2 = scmp.lt.s32.totalorder %s1616_s14, %s1616_s14 }
  0x3e   : > { %p1619_p12 = pnand %p1617_p11, %p1529_p7  ;;  %p1626_p5 = por %p1625_p2, %p1624_p0 }
  0x3f   : > { %1430 = dma.hbm_to_vmem [thread:$0]  (!%p1877_p6), %s2202_s5, 1024, %s367_s15, [#allocation6], %s1766_s17, %s1766_s17, %s1767_s18  }
  0x40   : > { %p1620_p13 = pneg %p1619_p12 }
  0x42   : > { %p1627_p8 = pnand %p1626_p5, %p1620_p13 }
  0x44   : > { %1630 = shalt.err (!%p1627_p8)
}
  0x45   : > { %s2203_s8 = sld [smem:[#allocation25_spill]]  ;;  %s1208_s13 = sadd.s32 4294967294, %s1761_s24  }
  0x46   : > { %s1936_s16 = sadd.s32 1, %s1761_s24   ;;  %s41_s20 = sadd.s32 1, %s1757_s23 }
  0x47   : > { %2204 = sst [smem:[#allocation20_spill]] %s1936_s16  ;;  %s38_s19 = ssub.s32 %s1761_s24, %s1936_s16 }
  0x48   : > { %p39_p7 = scmp.eq.s32.totalorder %s38_s19, 0  ;;  %p48_p9 = scmp.ne.s32.totalorder %s1757_s23, %s1753_s22 }
  0x49   : > { %p49_p10 = scmp.eq.s32.totalorder %s1761_s24, 0  ;;  %p54_p11 = scmp.ne.s32.totalorder %s1753_s22, %s1749_s21 }
  0x4a   : > { %s1947_s25 = scalar_select %p39_p7, %s1757_s23, %s41_s20  }
  0x4b   : > { %1436 = dma.hbm_to_vmem [thread:$0]  (!%p1877_p6), %s2203_s8, 1024, %s396_s29, [#allocation9], %s1766_s17, %s1766_s17, %s1767_s18  }
  0x4c   : > { %2205 = sst [smem:[#allocation21_spill]] %s1947_s25  ;;  %p1949_p12 = por %p49_p10, %p48_p9 }
  0x4d   : > { %p1955_p6 = por %p2186_p1, %p54_p11  ;;  %p267_p13 = scmp.eq.s32.totalorder %s1863_s27, 1 }
  0x4e   : > { %p273_p0 = scmp.eq.s32.totalorder %s1208_s13, 1  ;;  %p1452_p2 = scmp.lt.s32.totalorder %s1761_s24, 2 }
  0x4f   : > { %s2207_s17 = scalar_select %p1955_p6, 1, 0 }
  0x50   : > { %s412_s18 = sand.u32 1, %s1757_s23   ;;  %p1962_p5 = por %p267_p13, %p48_p9 }
  0x51   : > { %p1966_p8 = por %p273_p0, %p54_p11  ;;  %s1215_s15 = sshll.u32 %s412_s18, 2 }
  0x52   : > { %s2208_s29 = scalar_select %p1962_p5, 1, 0 }
  0x53   : > { %s2209_s14 = scalar_select %p1966_p8, 1, 0 }
  0x54   : > { %s1216_s26 = sshll.u32 %s1761_s24, 6  ;;  %s416_s13 = scalar_lea.vmem [#allocation2], %s1215_s15 }
  0x55   : > { %s1974_s1 = scalar_lea.hbm %s2173_s0, %s1216_s26  ;;  %s423_s5 = sshll.u32 %s416_s13, 4  ;;  %s424_s5 = int_to_ptr.vmem [resolvable:$true] %s423_s5 }
  0x56   : > { %p1978_p7 = pnand %p1452_p2, %p1949_p12  ;;  %s413_s8 = scalar_lea.sflag [#allocation3], %s412_s18 }
  0x57   : > { %s1631_s25 = scalar_lea.hbm %s1974_s1, 64  ;;  %s1636_s20 = scalar_lea.hbm %s2173_s0, 128 }
  0x58   : > { %p1632_p9 = scmp.ne.s32.totalorder %s1974_s1, %s1631_s25  ;;  %p1633_p10 = pneg %p1978_p7 }
  0x59   : > { %p1637_p0 = scmp.lt.s32.totalorder %s1974_s1, %s2173_s0  ;;  %p1638_p12 = scmp.lt.s32.totalorder %s1636_s20, %s1631_s25 }
  0x5a   : > { %p1634_p11 = pnand %p1633_p10, %p1632_p9 }
  0x5b   : > { %p1639_p2 = por %p1638_p12, %p1637_p0 }
  0x5c   : > { %p1635_p13 = pneg %p1634_p11 }
  0x5e   : > { %p1640_p4 = pnand %p1639_p2, %p1635_p13 }
  0x60   : > { %1643 = shalt.err (!%p1640_p4)
}
  0x61   : > { %s1644_s30 = scalar_lea.vmem %s424_s5, 64  ;;  %s1771_s18 = smov [#allocation2]  }
  0x62   : > { %p1645_p1 = scmp.ne.s32.totalorder %s424_s5, %s1644_s30  ;;  %s1649_s23 = sshll.u32 %s1771_s18, 4  ;;  %s1650_s23 = int_to_ptr.vmem [resolvable:$false] %s1649_s23 }
  0x63   : > { %s1651_s16 = scalar_lea.vmem %s1650_s23, 128  ;;  %p1652_p9 = scmp.lt.s32.totalorder %s424_s5, %s1650_s23 }
  0x64   : > { %p1647_p8 = pnand %p1645_p1, %p1633_p10  ;;  %p1653_p11 = scmp.lt.s32.totalorder %s1651_s16, %s1644_s30 }
  0x66   : > { %p1648_p5 = pneg %p1647_p8  ;;  %p1654_p6 = por %p1653_p11, %p1652_p9 }
  0x68   : > { %p1655_p3 = pnand %p1654_p6, %p1648_p5 }
  0x6a   : > { %1658 = shalt.err (!%p1655_p3)
}
  0x6b   : > { %1440 = dma.hbm_to_vmem [thread:$0]  (!%p1978_p7), %s1974_s1, 64, %s424_s5, %s413_s8  }
  0x6c   : > { %p2211_p13 = scmp.ne.s32.totalorder %s2198_s28, 0 }
  0x6d   : > { %s1999_s25 = sand.u32 (!%p2211_p13), 1, %s1753_s22   ;;  %p2212_p1 = scmp.ne.s32.totalorder (!%p2211_p13), %s2207_s17, 0 }
  0x6e   : > { %432 = sbr.rel (%p2211_p13) target bundleno = 1579 (0x62b), region = 60  ;;  %s1218_s26 = sshll.u32 (!%p2211_p13), %s1999_s25, 2 }
  0x6f   : > { %s435_s19 = scalar_lea.sflag (!%p2211_p13), [#allocation3], %s1999_s25  ;;  %s2003_s23 = scalar_lea.vmem (!%p2211_p13), [#allocation2], %s1218_s26 }
  0x73   : > { %1728 = dma.done.wait (%p2212_p1), %s435_s19, 64  }
  0x74   : > { %1730 = vsyncadd (%p2212_p1), %s435_s19, 4294967232  ;;  %p2213_p3 = scmp.eq.s32.totalorder %s1863_s27, 0 }
  0x76   : > { %1732 = dma.done.wait (%p2213_p3), [#allocation6], 2048   ;;  %p2214_p4 = pmov %p2213_p3 }
  0x77   : > { %p2215_p6 = pmov %p2213_p3 }
  0x78   : > { %1734 = vsyncadd (%p2214_p4), [#allocation6], 4294965248 }
  0x79   : > { %1736 = dma.done.wait (%p2215_p6), [#allocation9], 3072   ;;  %p2216_p5 = pmov %p2213_p3 }
  0x7a   : > { %v1772_v0 = vmov 0.0   ;;  %vm1773_vm0 = vmmov 0   ;;  %v1501_v1 = vld [vmem:[#allocation5 + $0x38] sm:$0xff]   ;;  %v1502_v2 = vld [vmem:[#allocation5 + $0x30] sm:$0xff]   ;;  %v1503_v3 = vld [vmem:[#allocation5 + $0x28] sm:$0xff]   ;;  %p503_p8 = scmp.lt.s32.totalorder %s1863_s27, 1 }
  0x7b   : > { %1738 = vsyncadd (%p2216_p5), [#allocation9], 4294964224  ;;  %1307 = vmatprep.subr.bf16.mxu0 %v1772_v0  ;;  %1323 = vmatprep.mubr.msk.bf16.mxu0 %vm1773_vm0, %v1772_v0  ;;  %v1504_v4 = vld [vmem:[#allocation5 + $0x20] sm:$0xff]   ;;  %v1505_v5 = vld [vmem:[#allocation5 + $0x18] sm:$0xff]   ;;  %vm990_vm3 = vcmask 7168   ;;  %s1256_s1 = sshll.u32 %s1863_s27, 3 }
  0x7c   : > { %1327 = vmatprep.subr.bf16.mxu1 %v1772_v0  ;;  %1343 = vmatprep.mubr.msk.bf16.mxu1 %vm1773_vm0, %v1772_v0  ;;  %v1506_v6 = vld [vmem:[#allocation5 + $0x10] sm:$0xff]   ;;  %v1507_v7 = vld [vmem:[#allocation5 + $0x8] sm:$0xff]   ;;  %v1508_v8 = vld [vmem:[#allocation5] sm:$0xff]   ;;  %s504_s30 = scalar_select %p503_p8, %s1863_s27, 1 }
  0x7d   : > { %1308 = vmatpush3.bf16.msra.mxu0 %v1501_v1  ;;  %v508_v9 = vld [vmem:[%s2003_s23] sm:$0xf]  ;;  %v1510_v19 = vld [vmem:[#allocation7 + $0x30] sm:$0xff]   ;;  %v1511_v20 = vld [vmem:[#allocation7 + $0x28] sm:$0xff]   ;;  %s1223_s5 = sshll.u32 %s1999_s25, 3  ;;  %s1259_s28 = sshll.u32 %s1863_s27, 7 }
  0x7e   : > { %1309 = vmatprep.subr.bf16.mxu0 %v1772_v0  ;;  %v1225_v10 = vld [vmem:[%s2175_s2] ss:$0 sm:$0xff]  ;;  %v1512_v21 = vld [vmem:[#allocation7 + $0x20] sm:$0xff]   ;;  %v1514_v23 = vld [vmem:[#allocation7 + $0x10] sm:$0xff]   ;;  %s1224_s18 = sshll.u32 %s504_s30, 3  ;;  %s490_s7 = scalar_lea.vmem [#allocation11], %s1223_s5 }
  0x7f   : > { %v1509_v18 = vld [vmem:[#allocation7 + $0x38] sm:$0xff]   ;;  %v1515_v24 = vld [vmem:[#allocation7 + $0x8] sm:$0xff]   ;;  %v1516_v25 = vld [vmem:[#allocation7] sm:$0xff]   ;;  %s506_s23 = scalar_lea.vmem %s2184_s11, %s1224_s18  ;;  %s1032_s8 = sshll.u32 %s490_s7, 4  ;;  %s2107_s8 = int_to_ptr.vmem [resolvable:$true] %s1032_s8 }
  0x80   : > { %1328 = vmatpush3.bf16.msra.mxu1 %v1509_v18  ;;  %v1513_v22 = vld [vmem:[#allocation7 + $0x18] sm:$0xff]   ;;  %v1518_v27 = vld [vmem:[#allocation10 + $0x30] sm:$0xff]   ;;  %v1519_v28 = vld [vmem:[#allocation10 + $0x28] sm:$0xff]   ;;  %s2112_s20 = scalar_lea.hbm %s2183_s10, %s1259_s28  ;;  %s1011_s15 = scalar_lea.sflag [#allocation4], %s1999_s25 }
  0x81   : > { %1310 = vmatpush3.bf16.msra.mxu0 %v1502_v2  ;;  %1329 = vmatprep.subr.bf16.mxu1 %v1772_v0  ;;  %v1517_v26 = vld [vmem:[#allocation10 + $0x38] sm:$0xff]   ;;  %v1520_v29 = vld [vmem:[#allocation10 + $0x20] sm:$0xff]   ;;  %v1522_v31 = vld [vmem:[#allocation10 + $0x10] sm:$0xff]   ;;  %s1659_s13 = scalar_lea.vmem %s2107_s8, 128  ;;  %p2217_p10 = scmp.ne.s32.totalorder %s2208_s29, 0 }
  0x82   : > { %1311 = vmatprep.subr.bf16.mxu0 %v1772_v0  ;;  %v1521_v30 = vld [vmem:[#allocation10 + $0x18] sm:$0xff]   ;;  %v1523_v32 = vld [vmem:[#allocation10 + $0x8] sm:$0xff]   ;;  %v1524_v48 = vld [vmem:[#allocation10] sm:$0xff]   ;;  %p1660_p7 = scmp.ne.s32.totalorder %s2107_s8, %s1659_s13  ;;  %s1775_s30 = smov [#allocation11]  }
  0x83   : > { %v1234_v42 = vld [vmem:[%s2176_s3] ss:$0 sm:$0xff]  ;;  %v909_v18 = vld [vmem:[#allocation8 + $0x30] sm:$0xff]  ;;  %s1663_s18 = sshll.u32 %s1775_s30, 4  ;;  %s1664_s18 = int_to_ptr.vmem [resolvable:$false] %s1663_s18 }
  0x84   : > { %1330 = vmatpush3.bf16.msra.mxu1 %v1510_v19  ;;  %v1235_v44 = vld [vmem:[%s2177_s4] ss:$0 sm:$0xff]  ;;  %v908_v19 = vld [vmem:[#allocation8 + $0x28] sm:$0xff]  ;;  %p1661_p0 = pnand %p1660_p7, %p2217_p10  ;;  %s1665_s26 = scalar_lea.vmem %s1664_s18, 256 }
  0x85   : > { %1312 = vmatpush3.bf16.msra.mxu0 %v1503_v3  ;;  %1331 = vmatprep.subr.bf16.mxu1 %v1772_v0  ;;  %v1236_v49 = vld [vmem:[%s2179_s6] ss:$0 sm:$0xff]  ;;  %v880_v3 = vlaneseq  ;;  %p1666_p2 = scmp.lt.s32.totalorder %s2107_s8, %s1664_s18  ;;  %p1667_p9 = scmp.lt.s32.totalorder %s1665_s26, %s1659_s13 }
  0x86   : > { %1313 = vmatprep.subr.bf16.mxu0 %v1772_v0  ;;  %v1253_v57 = vld [vmem:[%s2182_s9] ss:$0 sm:$0xff]  ;;  %p1662_p12 = pneg %p1661_p0 }
  0x87   : > { %p1668_p11 = por %p1667_p9, %p1666_p2 }
  0x88   : > { %1332 = vmatpush3.bf16.msra.mxu1 %v1511_v20  ;;  %v907_v20 = vld [vmem:[#allocation8 + $0x20] sm:$0xff] }
  0x89   : > { %1314 = vmatpush3.bf16.msra.mxu0 %v1504_v4  ;;  %1333 = vmatprep.subr.bf16.mxu1 %v1772_v0  ;;  %v2079_v4 = vand.u32 127, %v880_v3  ;;  %p1669_p13 = pnand %p1668_p11, %p1662_p12 }
  0x8a   : > { %1315 = vmatprep.subr.bf16.mxu0 %v1772_v0 }
  0x8c   : > { %1334 = vmatpush3.bf16.msra.mxu1 %v1512_v21  ;;  %v906_v21 = vld [vmem:[#allocation8 + $0x18] sm:$0xff] }
  0x8d   : > { %1316 = vmatpush3.bf16.msra.mxu0 %v1505_v5  ;;  %1335 = vmatprep.subr.bf16.mxu1 %v1772_v0 }
  0x8e   : > { %1317 = vmatprep.subr.bf16.mxu0 %v1772_v0 }
  0x90   : > { %1336 = vmatpush3.bf16.msra.mxu1 %v1513_v22 }
  0x91   : > { %1318 = vmatpush3.bf16.msra.mxu0 %v1506_v6  ;;  %1337 = vmatprep.subr.bf16.mxu1 %v1772_v0 }
  0x92   : > { %1319 = vmatprep.subr.bf16.mxu0 %v1772_v0 }
  0x94   : > { %1338 = vmatpush3.bf16.msra.mxu1 %v1514_v23 }
  0x95   : > { %1320 = vmatpush3.bf16.msra.mxu0 %v1507_v7  ;;  %1339 = vmatprep.subr.bf16.mxu1 %v1772_v0 }
  0x96   : > { %1321 = vmatprep.subr.bf16.mxu0 %v1772_v0 }
  0x98   : > { %1340 = vmatpush3.bf16.msra.mxu1 %v1515_v24 }
  0x99   : > { %1322 = vmatpush3.bf16.msra.mxu0 %v1508_v8  ;;  %1341 = vmatprep.subr.bf16.mxu1 %v1772_v0 }
  0x9a   : > { %1347 = vmatprep.subr.bf16.mxu0 %v1772_v0 }
  0x9c   : > { %1324 = vmatmul.mubr.bf16.vlgmr.msra.gmra.mxu0 %v508_v9  ;;  %1342 = vmatpush3.bf16.msra.mxu1 %v1516_v25  ;;  %v918_v9 = vld [vmem:[#allocation8 + $0x78] sm:$0xff] }
  0x9d   : > { %1363 = vmatprep.mubr.msk.bf16.mxu0 %vm1773_vm0, %v1772_v0  ;;  %1367 = vmatprep.subr.mxu1 %v1772_v0 }
  0x9e   : > { %1348 = vmatpush3.bf16.msra.mxu0 %v1517_v26  ;;  %v905_v26 = vld [vmem:[#allocation8 + $0x10] sm:$0xff] }
  0x9f   : > { %1349 = vmatprep.subr.bf16.mxu0 %v1772_v0 }
  0xa2   : > { %1350 = vmatpush3.bf16.msra.mxu0 %v1518_v27  ;;  %v904_v27 = vld [vmem:[#allocation8 + $0x8] sm:$0xff] }
  0xa3   : > { %1351 = vmatprep.subr.bf16.mxu0 %v1772_v0 }
  0xa6   : > { %1352 = vmatpush3.bf16.msra.mxu0 %v1519_v28  ;;  %v903_v28 = vld [vmem:[#allocation8] sm:$0xff] }
  0xa7   : > { %1353 = vmatprep.subr.bf16.mxu0 %v1772_v0 }
  0xaa   : > { %1354 = vmatpush3.bf16.msra.mxu0 %v1520_v29 }
  0xab   : > { %1355 = vmatprep.subr.bf16.mxu0 %v1772_v0 }
  0xae   : > { %1356 = vmatpush3.bf16.msra.mxu0 %v1521_v30 }
  0xaf   : > { %1357 = vmatprep.subr.bf16.mxu0 %v1772_v0 }
  0xb2   : > { %1358 = vmatpush3.bf16.msra.mxu0 %v1522_v31 }
  0xb3   : > { %1359 = vmatprep.subr.bf16.mxu0 %v1772_v0 }
  0xb6   : > { %1360 = vmatpush3.bf16.msra.mxu0 %v1523_v32 }
  0xb7   : > { %1361 = vmatprep.subr.bf16.mxu0 %v1772_v0 }
  0xba   : > { %1362 = vmatpush3.bf16.msra.mxu0 %v1524_v48 }
 0x15c   : > { %v614_v11 = vpop.f32.mrf.mxu0 }
 0x15d   : > { %v615_v12 = vadd.f32 %v1225_v10, %v614_v11  ;;  %v917_v10 = vld [vmem:[#allocation8 + $0x70] sm:$0xff]  ;;  %v916_v11 = vld [vmem:[#allocation8 + $0x68] sm:$0xff] }
 0x15e   : > { %v1325_v13 = vpop.f32.mrf.mxu0 }
 0x15f   : > { %v2037_v14 = vmax.f32 %v615_v12, 0.0  ;;  %v915_v12 = vld [vmem:[#allocation8 + $0x60] sm:$0xff]  ;;  %v914_v13 = vld [vmem:[#allocation8 + $0x58] sm:$0xff] }
 0x160   : > { %v617_v15 = vpop.f32.mrf.mxu0 }
 0x161   : > { %621 = vadd.xlane.f32.xlu0 %v2037_v14  ;;  %v624_v17 = vmul.f32 %v2037_v14, %v2037_v14  ;;  %v912_v15 = vld [vmem:[#allocation8 + $0x48] sm:$0xff] }
 0x162   : > { %v1326_v16 = vpop.f32.mrf.mxu0 }
 0x163   : > { %v911_v16 = vld [vmem:[#allocation8 + $0x40] sm:$0xff] }
 0x165   : > { %625 = vadd.xlane.f32.xlu0 %v624_v17  ;;  %v910_v17 = vld [vmem:[#allocation8 + $0x38] sm:$0xff] }
 0x1ea   : > { %v622_v33 = vpop.xlane.xlu0 %621 }
 0x1eb   : > { %v623_v34 = vmul.f32 0.03125, %v622_v33 }
 0x1ed   : > { %v628_v36 = vmul.f32 %v623_v34, %v623_v34  ;;  %v630_v40 = vsub.f32 %v2037_v14, %v623_v34  ;;  %v913_v14 = vld [vmem:[#allocation8 + $0x50] sm:$0xff]  ;;  %v1774_v34 = vmov 1.0  }
 0x1ee   : > { %v626_v35 = vpop.xlane.xlu0 %625 }
 0x1ef   : > { %v627_v37 = vmul.f32 0.03125, %v626_v35  ;;  %v993_v35 = vshrl.u32 %v880_v3, 7 }
 0x1f1   : > { %v629_v38 = vsub.f32 %v627_v37, %v628_v36  ;;  %v995_v36 = vstv %s1256_s1 }
 0x1f2   : > { %v996_v37 = vadd.s32 %v995_v36, %v993_v35 }
 0x1f3   : > { %v631_v39 = vadd.f32 1e-05, %v629_v38 }
 0x1f4   : > { %vm998_vm5 = vcmp.lt.s32.totalorder %v996_v37, 16 }
 0x1f5   : > { %1525 = vrsqrt.f32 %v631_v39  ;;  %v1257_v39 = vsel %vm998_vm5, 1.0, %v1772_v0 }
 0x202   : > { %v1526_v41 = vpop.eup %1525 }
 0x203   : > { %v633_v43 = vmul.f32 %v1526_v41, %v630_v40 }
 0x205   : > { %v641_v45 = vmul.f32 %v1234_v42, %v633_v43 }
 0x207   : > { %v649_v46 = vadd.f32 %v1235_v44, %v641_v45 }
 0x209   : > { %v650_v47 = vpack.c.bf16 %v649_v46, %v649_v46 }
 0x20b   : > { %1344 = vmatmul.mubr.bf16.vlgmr.msra.gmra.mxu1 %v650_v47 }
 0x20c   : > { %1399 = vmatprep.mubr.msk.f32.mxu1 %vm1773_vm0, %v1772_v0  ;;  %1368 = vmatpush3.msra.mxu1 %v918_v9 }
 0x20d   : > { %1369 = vmatprep.subr.mxu1 %v1772_v0 }
 0x20e   : > { %1370 = vmatpush3.msra.mxu1 %v917_v10 }
 0x20f   : > { %1371 = vmatprep.subr.mxu1 %v1772_v0 }
 0x210   : > { %1372 = vmatpush3.msra.mxu1 %v916_v11 }
 0x211   : > { %1373 = vmatprep.subr.mxu1 %v1772_v0 }
 0x212   : > { %1374 = vmatpush3.msra.mxu1 %v915_v12 }
 0x213   : > { %1375 = vmatprep.subr.mxu1 %v1772_v0 }
 0x214   : > { %1376 = vmatpush3.msra.mxu1 %v914_v13 }
 0x215   : > { %1377 = vmatprep.subr.mxu1 %v1772_v0 }
 0x216   : > { %1378 = vmatpush3.msra.mxu1 %v913_v14 }
 0x217   : > { %1379 = vmatprep.subr.mxu1 %v1772_v0 }
 0x218   : > { %1380 = vmatpush3.msra.mxu1 %v912_v15 }
 0x219   : > { %1381 = vmatprep.subr.mxu1 %v1772_v0 }
 0x21a   : > { %1382 = vmatpush3.msra.mxu1 %v911_v16 }
 0x21b   : > { %1383 = vmatprep.subr.mxu1 %v1772_v0 }
 0x21c   : > { %1384 = vmatpush3.msra.mxu1 %v910_v17 }
 0x21d   : > { %1385 = vmatprep.subr.mxu1 %v1772_v0 }
 0x21e   : > { %1386 = vmatpush3.msra.mxu1 %v909_v18 }
 0x21f   : > { %1387 = vmatprep.subr.mxu1 %v1772_v0 }
 0x220   : > { %1388 = vmatpush3.msra.mxu1 %v908_v19 }
 0x221   : > { %1389 = vmatprep.subr.mxu1 %v1772_v0 }
 0x222   : > { %1390 = vmatpush3.msra.mxu1 %v907_v20 }
 0x223   : > { %1391 = vmatprep.subr.mxu1 %v1772_v0 }
 0x224   : > { %1392 = vmatpush3.msra.mxu1 %v906_v21 }
 0x225   : > { %1393 = vmatprep.subr.mxu1 %v1772_v0 }
 0x226   : > { %1394 = vmatpush3.msra.mxu1 %v905_v26 }
 0x227   : > { %1395 = vmatprep.subr.mxu1 %v1772_v0 }
 0x228   : > { %1396 = vmatpush3.msra.mxu1 %v904_v27 }
 0x229   : > { %1397 = vmatprep.subr.mxu1 %v1772_v0 }
 0x22a   : > { %1398 = vmatpush3.msra.mxu1 %v903_v28 }
 0x2cb   : > { %v756_v50 = vpop.f32.mrf.mxu1 }
 0x2cc   : > { %v2069_v51 = vadd.f32 %v1236_v49, %v756_v50 }
 0x2cd   : > { %v1345_v52 = vpop.f32.mrf.mxu1 }
 0x2ce   : > { %v765_v53 = vpack.c.bf16 %v2069_v51, %v2069_v51  ;;  %v762_v54 = vmul.f32 %v2069_v51, %v2069_v51 }
 0x2cf   : > { %v759_v55 = vpop.f32.mrf.mxu1 }
 0x2d0   : > { %1364 = vmatmul.mubr.bf16.vlgmr.msra.gmra.mxu0 %v765_v53  ;;  %763 = vadd.xlane.f32.xlu1 %v762_v54 }
 0x2d1   : > { %v1346_v56 = vpop.f32.mrf.mxu1 }
 0x359   : > { %v764_v58 = vpop.xlane.xlu1 %763 }
 0x35a   : > { %v877_v60 = vadd.f32 %v1253_v57, %v764_v58 }
 0x390   : > { %v864_v59 = vpop.f32.mrf.mxu0 }
 0x391   : > { %v878_v61 = vmul.f32 2.0, %v864_v59 }
 0x392   : > { %v1365_v62 = vpop.f32.mrf.mxu0 }
 0x393   : > { %v879_v63 = vsub.f32 %v877_v60, %v878_v61 }
 0x394   : > { %v867_v1 = vpop.f32.mrf.mxu0 }
 0x395   : > { %882 = vmin.xlane.f32.xlu1 %v879_v63 }
 0x396   : > { %v1366_v2 = vpop.f32.mrf.mxu0 }
 0x41e   : > { %v883_v5 = vpop.xlane.xlu1 %882 }
 0x41f   : > { %vm884_vm1 = vcmp.eq.f32.partialorder %v879_v63, %v883_v5 }
 0x420   : > { %v885_v6 = vsel %vm884_vm1, %v2079_v4, 128 }
 0x421   : > { %v887_v7 = vshra.s32 %v885_v6, 16  ;;  %v886_v22 = vand.u32 65535, %v885_v6 }
 0x423   : > { %v889_v8 = vcvt.s32.f32 %v887_v7  ;;  %v888_v24 = vcvt.s32.f32 %v886_v22 }
 0x425   : > { %890 = vmin.xlane.f32.xlu0 %v889_v8 }
 0x4ae   : > { %v891_v23 = vpop.xlane.xlu0 %890 }
 0x4af   : > { %vm892_vm2 = vcmp.eq.f32.partialorder %v889_v8, %v891_v23  ;;  %v897_v29 = vcvt.f32.s32 %v891_v23 }
 0x4b0   : > { %v893_v25 = vsel %vm892_vm2, %v888_v24, inf }
 0x4b1   : > { %894 = vmin.xlane.f32.xlu1 %v893_v25  ;;  %v898_v31 = vshll.u32 %v897_v29, 16 }
 0x53a   : > { %v895_v30 = vpop.xlane.xlu1 %894 }
 0x53b   : > { %v896_v32 = vcvt.f32.s32 %v895_v30 }
 0x53d   : > { %v899_v33 = vadd.s32 %v898_v31, %v896_v32 }
 0x53f   : > { %vm900_vm4 = vcmp.eq.s32.totalorder %v2079_v4, %v899_v33  ;;  %991 = vst.msk [vmem:[%s506_s23] sm:$0xff] %vm990_vm3, %v899_v33 }
 0x540   : > { %1400 = vmatmul.mubr.msk.f32.vlgmr.msra.gmra.mxu1 %vm900_vm4, %v1774_v34 }
 0x600   : > { %v985_v38 = vpop.f32.mrf.mxu1 }
 0x601   : > { %989 = vst [vmem:[%s490_s7] sm:$0xff] %v985_v38  ;;  %v997_v40 = vsub.f32 %v985_v38, %v2069_v51 }
 0x602   : > { %v1401_v41 = vpop.f32.mrf.mxu1 }
 0x603   : > { %1672 = shalt.err (!%p1669_p13)
}
 0x604   : > { %s1673_s19 = scalar_lea.hbm %s2112_s20, 128  ;;  %s1677_s5 = scalar_lea.hbm %s2183_s10, 256 }
 0x605   : > { %p1674_p1 = scmp.ne.s32.totalorder %s2112_s20, %s1673_s19  ;;  %p1678_p6 = scmp.lt.s32.totalorder %s2112_s20, %s2183_s10 }
 0x606   : > { %p1679_p5 = scmp.lt.s32.totalorder %s1677_s5, %s1673_s19 }
 0x607   : > { %p1675_p3 = pnand %p1674_p1, %p2217_p10 }
 0x608   : > { %p1680_p8 = por %p1679_p5, %p1678_p6 }
 0x609   : > { %p1676_p4 = pneg %p1675_p3 }
 0x60b   : > { %p1681_p7 = pnand %p1680_p8, %p1676_p4 }
 0x60d   : > { %1684 = shalt.err (!%p1681_p7)
}
 0x60e   : > { %1420 = dma.vmem_to_hbm [thread:$0]  (%p2217_p10), %s2107_s8, 128, %s2112_s20, %s1011_s15   ;;  %v1001_v0 = vmul.f32 %v1257_v39, %v997_v40 }
 0x60f   : > { %s1260_s16 = sshll.u32 %s1863_s27, 4  ;;  %s502_s17 = scalar_lea.vmem [#allocation12], %s1999_s25 }
 0x610   : > { %v1002_v42 = vmul.f32 %v1001_v0, %v1001_v0  ;;  %s1048_s13 = sshll.u32 %s502_s17, 4  ;;  %s1046_s26 = scalar_lea.hbm %s2185_s12, %s1260_s16  ;;  %s1049_s13 = int_to_ptr.vmem [resolvable:$true] %s1048_s13 }
 0x611   : > { %s1020_s19 = scalar_lea.sflag [#allocation13], %s1999_s25  ;;  %s1685_s8 = scalar_lea.vmem %s1049_s13, 16 }
 0x612   : > { %v1003_v43 = vrot.slane %v1002_v42, 4  ;;  %p1686_p0 = scmp.ne.s32.totalorder %s1049_s13, %s1685_s8  ;;  %s1776_s20 = smov [#allocation12]  }
 0x613   : > { %s1689_s15 = sshll.u32 %s1776_s20, 4  ;;  %s1690_s15 = int_to_ptr.vmem [resolvable:$false] %s1689_s15 }
 0x614   : > { %v1004_v44 = vadd.f32 %v1003_v43, %v1002_v42  ;;  %p1687_p12 = pnand %p1686_p0, %p2217_p10  ;;  %s1691_s27 = scalar_lea.vmem %s1690_s15, 32 }
 0x615   : > { %p1692_p9 = scmp.lt.s32.totalorder %s1049_s13, %s1690_s15  ;;  %p1693_p11 = scmp.lt.s32.totalorder %s1691_s27, %s1685_s8 }
 0x616   : > { %v1005_v45 = vrot.slane %v1004_v44, 2  ;;  %p1688_p2 = pneg %p1687_p12 }
 0x617   : > { %p1694_p13 = por %p1693_p11, %p1692_p9 }
 0x618   : > { %v1006_v46 = vadd.f32 %v1005_v45, %v1004_v44 }
 0x619   : > { %p1695_p1 = pnand %p1694_p13, %p1688_p2 }
 0x61a   : > { %v1007_v47 = vrot.slane %v1006_v46, 1 }
 0x61c   : > { %v1008_v48 = vadd.f32 %v1007_v47, %v1006_v46 }
 0x61e   : > { %1009 = vst [vmem:[%s502_s17] sm:$0x1] %v1008_v48 }
 0x61f   : > { %1698 = shalt.err (!%p1695_p1)
}
 0x620   : > { %s1699_s23 = scalar_lea.hbm %s1046_s26, 16  ;;  %s1703_s5 = scalar_lea.hbm %s2185_s12, 32 }
 0x621   : > { %p1700_p3 = scmp.ne.s32.totalorder %s1046_s26, %s1699_s23  ;;  %p1704_p5 = scmp.lt.s32.totalorder %s1046_s26, %s2185_s12 }
 0x622   : > { %p1705_p8 = scmp.lt.s32.totalorder %s1703_s5, %s1699_s23 }
 0x623   : > { %p1701_p4 = pnand %p1700_p3, %p2217_p10 }
 0x624   : > { %p1706_p7 = por %p1705_p8, %p1704_p5 }
 0x625   : > { %p1702_p6 = pneg %p1701_p4 }
 0x627   : > { %p1707_p0 = pnand %p1706_p7, %p1702_p6 }
 0x629   : > { %1710 = shalt.err (!%p1707_p0)
}
 0x62a   : > { %1421 = dma.vmem_to_hbm [thread:$0]  (%p2217_p10), %s1049_s13, 16, %s1046_s26, %s1020_s19  }
 0x62b PF: > { %s1060_s16 = sand.u32 1, %s1749_s21   ;;  %p2218_p12 = scmp.ne.s32.totalorder %s2209_s14, 0 }
 0x62c   : > { %p2219_p2 = scmp.ge.s32.totalorder %s1761_s24, 2  ;;  %s1061_s17 = scalar_lea.sflag [#allocation4], %s1060_s16 }
 0x62e   : > { %p1442_p9 = pnand %p2219_p2, %p2218_p12 }
 0x630   : > { %p1443_p11 = pneg %p1442_p9 }
 0x632   : > { %1740 = dma.done.wait (%p1443_p11), %s1061_s17, 128  }
 0x633   : > { %1742 = vsyncadd (%p1443_p11), %s1061_s17, 4294967168  ;;  %s1077_s30 = scalar_lea.sflag [#allocation13], %s1060_s16 }
 0x634   : > { %1744 = dma.done.wait (%p1443_p11), %s1077_s30, 16  }
 0x635   : > { %1746 = vsyncadd (%p1443_p11), %s1077_s30, 4294967280  ;;  %s2220_s24 = sld [smem:[#allocation20_spill]]  ;;  %s2223_s21 = smov %s1753_s22 }
 0x636   : > { %s2221_s18 = sld [smem:[#allocation19_spill]] }
 0x637   : > { %s2222_s23 = sld [smem:[#allocation21_spill]] }
 0x63b   : > { %p31_p10 = scmp.ge.s32.totalorder %s2220_s24, 4  }
 0x63c   : > { %s2224_s22 = smov %s2221_s18 }
 0x63d   :  { %33 = sbr.rel (!%p31_p10) target bundleno = 14 (0xe), region = 150 }
 0x642   :  { %1081 = vsyncpa [#allocation3], 1 }
 0x643   :  { %1083 = vsyncpa [#allocation3 + $0x1], 1 }
 0x644   :  { %1084 = vsyncpa [#allocation6], 1 }
 0x645   :  { %1085 = vsyncpa [#allocation9], 1 }
 0x646   :  { %1086 = vsyncpa [#allocation4], 1 }
 0x647   :  { %1088 = vsyncpa [#allocation4 + $0x1], 1 }
 0x648   :  { %1089 = vsyncpa [#allocation13], 1 }
 0x649   :  { %1091 = vsyncpa [#allocation13 + $0x1], 1 }

</bundles_post_ra>
